<compile_context>
chip_gen: v7x
topology: tpu7x:2x2x1
jax: 0.10.0
libtpu: 0.0.40
codegen_flags: <defaults>
</compile_context>

<pallas_src>
import functools

import jax
import jax.numpy as jnp
from jax.experimental import pallas as pl
from jax.experimental.pallas import tpu as pltpu


def _wavelet_kernel(W_ref, f_ref,
                    w1_ref, b1_ref, w2_ref, b2_ref,
                    hw_ref, hb_ref,
                    wo1_ref, bo1_ref, wo2_ref, bo2_ref,
                    out_ref, *, num_layers, hidden_dim):
    Bt, M, N = W_ref.shape
    Din = f_ref.shape[-1]
    H = hidden_dim

    W = W_ref[...]                              # (Bt, M, N)
    Wt = jnp.swapaxes(W, 1, 2)                  # (Bt, N, M)  -- hoisted, once per block
    f2 = f_ref[...].reshape(Bt * N, Din)        # fuse batch & node dims

    # input_layer_1 / input_layer_2 with tanh, batched over all Bt graphs.
    h = jnp.tanh(jnp.dot(f2, w1_ref[...], preferred_element_type=jnp.float32)
                 + b1_ref[...])                                         # (Bt*N, H)
    h = jnp.tanh(jnp.dot(h, w2_ref[...], preferred_element_type=jnp.float32)
                 + b2_ref[...])                                         # (Bt*N, H)

    wo1 = wo1_ref[...]                          # (H*(L+1), H)

    # output_layer_1 accumulated incrementally instead of concat + wide matmul.
    o1_pre = (jnp.dot(h, wo1[0:H, :], preferred_element_type=jnp.float32)
              + bo1_ref[...])                                           # (Bt*N, H)

    h_b = h.reshape(Bt, N, H)
    for l in range(num_layers):
        # W @ h  (batched)
        wh = jnp.einsum("bmn,bnh->bmh", W, h_b,
                        preferred_element_type=jnp.float32)             # (Bt, M, H)
        # hidden Linear, fused across the block
        lin = (jnp.dot(wh.reshape(Bt * M, H), hw_ref[l],
                       preferred_element_type=jnp.float32)
               + hb_ref[l])                                             # (Bt*M, H)
        # W^T @ lin  (batched, transpose hoisted)
        h_b = jnp.tanh(jnp.einsum("bnm,bmh->bnh", Wt, lin.reshape(Bt, M, H),
                                  preferred_element_type=jnp.float32))  # (Bt, N, H)
        # accumulate this layer's contribution to output_layer_1
        o1_pre = o1_pre + jnp.dot(h_b.reshape(Bt * N, H),
                                  wo1[(l + 1) * H:(l + 2) * H, :],
                                  preferred_element_type=jnp.float32)

    o1 = jnp.tanh(o1_pre)                                               # (Bt*N, H)
    o2 = jnp.sum(o1.reshape(Bt, N, H), axis=1)                          # (Bt, H)

    logits = (jnp.dot(o2, wo2_ref[...], preferred_element_type=jnp.float32)
              + bo2_ref[...])                                           # (Bt, Dout)
    m = jnp.max(logits, axis=-1, keepdims=True)
    e = jnp.exp(logits - m)
    out_ref[...] = e / jnp.sum(e, axis=-1, keepdims=True)               # softmax(dim=-1)


@functools.partial(jax.jit, static_argnames=("num_layers", "block_b"))
def wavelet_network_pallas(W, f, params, num_layers, block_b=8):
    B, M, N = W.shape
    Din = f.shape[-1]
    H = params["w1"].shape[1]
    Dout = params["wo2"].shape[1]

    Bt = min(block_b, B)
    B_pad = pl.cdiv(B, Bt) * Bt
    if B_pad != B:
        W = jnp.pad(W, ((0, B_pad - B), (0, 0), (0, 0)))
        f = jnp.pad(f, ((0, B_pad - B), (0, 0), (0, 0)))

    weight_order = ["w1", "b1", "w2", "b2", "hw", "hb",
                    "wo1", "bo1", "wo2", "bo2"]
    weights = [params[k] for k in weight_order]

    def batch_spec(shape):
        rest = tuple(shape[1:])
        nd = len(shape)
        return pl.BlockSpec((Bt,) + rest,
                            lambda b, _n=nd: (b,) + (0,) * (_n - 1))

    def full_spec(arr):
        nd = arr.ndim
        return pl.BlockSpec(arr.shape, lambda b, _n=nd: (0,) * _n)

    in_specs = ([batch_spec(W.shape), batch_spec(f.shape)]
                + [full_spec(w) for w in weights])
    out_spec = pl.BlockSpec((Bt, Dout), lambda b: (b, 0))

    out = pl.pallas_call(
        functools.partial(_wavelet_kernel,
                          num_layers=num_layers, hidden_dim=H),
        out_shape=jax.ShapeDtypeStruct((B_pad, Dout), jnp.float32),
        grid=(B_pad // Bt,),
        in_specs=in_specs,
        out_specs=out_spec,
        compiler_params=pltpu.CompilerParams(
            dimension_semantics=("parallel",)),
    )(W, f, *weights)
    return out[:B]


def init_params(key, num_layers, input_dim, hidden_dim, output_dim):
    """Deterministic init matching the nn.Linear shapes (weights stored (in, out))."""
    ks = jax.random.split(key, 4 + num_layers)

    def lin(k, din, dout):
        kw, kb = jax.random.split(k)
        bound = 1.0 / jnp.sqrt(din)
        w = jax.random.uniform(kw, (din, dout), jnp.float32, -bound, bound)
        b = jax.random.uniform(kb, (1, dout), jnp.float32, -bound, bound)
        return w, b

    w1, b1 = lin(ks[0], input_dim, hidden_dim)
    w2, b2 = lin(ks[1], hidden_dim, hidden_dim)
    hws, hbs = [], []
    for l in range(num_layers):
        w, b = lin(ks[2 + l], hidden_dim, hidden_dim)
        hws.append(w)
        hbs.append(b)
    hw = jnp.stack(hws)          # (L, H, H)
    hb = jnp.stack(hbs)          # (L, 1, H)
    wo1, bo1 = lin(ks[2 + num_layers], hidden_dim * (num_layers + 1), hidden_dim)
    wo2, bo2 = lin(ks[3 + num_layers], hidden_dim, output_dim)
    return dict(w1=w1, b1=b1, w2=w2, b2=b2, hw=hw, hb=hb,
                wo1=wo1, bo1=bo1, wo2=wo2, bo2=bo2)


def reference(W, f, p, num_layers):
    """Pure-JAX reference of the PyTorch forward."""
    h = jnp.tanh(f @ p["w1"] + p["b1"])
    h = jnp.tanh(h @ p["w2"] + p["b2"])
    hs = [h]
    for l in range(num_layers):
        wh = jnp.einsum("bmn,bnh->bmh", W, h)
        lin = wh @ p["hw"][l] + p["hb"][l]
        h = jnp.tanh(jnp.einsum("bnm,bmh->bnh", jnp.swapaxes(W, 1, 2), lin))
        hs.append(h)
    concat = jnp.concatenate(hs, axis=2)
    o1 = jnp.tanh(concat @ p["wo1"] + p["bo1"])
    o2 = jnp.sum(o1, axis=1)
    logits = o2 @ p["wo2"] + p["bo2"][0]
    return jax.nn.softmax(logits, axis=-1)


if __name__ == "__main__":
    B, M, N = 16, 16, 16
    num_layers, input_dim, hidden_dim, output_dim = 4, 4, 32, 3

    key = jax.random.PRNGKey(0)
    kW, kf, kp = jax.random.split(key, 3)
    W = jax.random.normal(kW, (B, M, N), jnp.float32) / jnp.sqrt(N)
    f = jax.random.normal(kf, (B, N, input_dim), jnp.float32)
    params = init_params(kp, num_layers, input_dim, hidden_dim, output_dim)

    out = wavelet_network_pallas(W, f, params, num_layers)
    out = jax.block_until_ready(out)

    ref = reference(W, f, params, num_layers)
    assert out.shape == (B, output_dim), out.shape
    assert jnp.allclose(out, ref, atol=1e-3, rtol=1e-3), (out, ref)

    print("KERNEL_OK")
</pallas_src>

<mosaic_0001>
module attributes {stable_mosaic.version = 11 : i64} {
  func.func @_wavelet_kernel(%arg0: i32, %arg1: memref<8x16x16xf32, #tpu.memory_space<vmem>>, %arg2: memref<8x16x4xf32, #tpu.memory_space<vmem>>, %arg3: memref<4x32xf32, #tpu.memory_space<vmem>>, %arg4: memref<1x32xf32, #tpu.memory_space<vmem>>, %arg5: memref<32x32xf32, #tpu.memory_space<vmem>>, %arg6: memref<1x32xf32, #tpu.memory_space<vmem>>, %arg7: memref<4x32x32xf32, #tpu.memory_space<vmem>>, %arg8: memref<4x1x32xf32, #tpu.memory_space<vmem>>, %arg9: memref<160x32xf32, #tpu.memory_space<vmem>>, %arg10: memref<1x32xf32, #tpu.memory_space<vmem>>, %arg11: memref<32x3xf32, #tpu.memory_space<vmem>>, %arg12: memref<1x3xf32, #tpu.memory_space<vmem>>, %arg13: memref<8x3xf32, #tpu.memory_space<vmem>>) attributes {dimension_semantics = [#tpu.dimension_semantics<parallel>], iteration_bounds = array<i64: 2>, scalar_prefetch = 0 : i64, scratch_operands = 0 : i64, tpu.core_type = #tpu.core_type<tc>, window_params = [{transform_indices = @transform_0, window_bounds = array<i64: 8, 16, 16>}, {transform_indices = @transform_1, window_bounds = array<i64: 8, 16, 4>}, {pipeline_mode = #tpu.pipeline_mode<synchronous>, transform_indices = @transform_2, window_bounds = array<i64: 4, 32>}, {pipeline_mode = #tpu.pipeline_mode<synchronous>, transform_indices = @transform_3, window_bounds = array<i64: 1, 32>}, {pipeline_mode = #tpu.pipeline_mode<synchronous>, transform_indices = @transform_4, window_bounds = array<i64: 32, 32>}, {pipeline_mode = #tpu.pipeline_mode<synchronous>, transform_indices = @transform_5, window_bounds = array<i64: 1, 32>}, {pipeline_mode = #tpu.pipeline_mode<synchronous>, transform_indices = @transform_6, window_bounds = array<i64: 4, 32, 32>}, {pipeline_mode = #tpu.pipeline_mode<synchronous>, transform_indices = @transform_7, window_bounds = array<i64: 4, 1, 32>}, {pipeline_mode = #tpu.pipeline_mode<synchronous>, transform_indices = @transform_8, window_bounds = array<i64: 160, 32>}, {pipeline_mode = #tpu.pipeline_mode<synchronous>, transform_indices = @transform_9, window_bounds = array<i64: 1, 32>}, {pipeline_mode = #tpu.pipeline_mode<synchronous>, transform_indices = @transform_10, window_bounds = array<i64: 32, 3>}, {pipeline_mode = #tpu.pipeline_mode<synchronous>, transform_indices = @transform_11, window_bounds = array<i64: 1, 3>}, {transform_indices = @transform_12, window_bounds = array<i64: 8, 3>}]} {
    %c0 = arith.constant 0 : index
    %c0_0 = arith.constant 0 : index
    %c0_1 = arith.constant 0 : index
    %0 = vector.load %arg1[%c0, %c0_0, %c0_1] : memref<8x16x16xf32, #tpu.memory_space<vmem>>, vector<8x16x16xf32>
    %1 = tpu.transpose %0, [0, 2, 1] : vector<8x16x16xf32> -> vector<8x16x16xf32>
    %c0_2 = arith.constant 0 : index
    %c0_3 = arith.constant 0 : index
    %c0_4 = arith.constant 0 : index
    %2 = vector.load %arg2[%c0_2, %c0_3, %c0_4] : memref<8x16x4xf32, #tpu.memory_space<vmem>>, vector<8x16x4xf32>
    %3 = vector.shape_cast %2 : vector<8x16x4xf32> to vector<128x4xf32>
    %c0_5 = arith.constant 0 : index
    %c0_6 = arith.constant 0 : index
    %4 = vector.load %arg3[%c0_5, %c0_6] : memref<4x32xf32, #tpu.memory_space<vmem>>, vector<4x32xf32>
    %cst = arith.constant dense<0.000000e+00> : vector<128x32xf32>
    %5 = tpu.matmul %3, %4, %cst {dimension_numbers = #tpu.dot_dimension_numbers<[1], [0], [0], [1], [0, 0, 1, 1], [], []>} : vector<128x4xf32>, vector<4x32xf32>, vector<128x32xf32> -> vector<128x32xf32>
    %c0_7 = arith.constant 0 : index
    %c0_8 = arith.constant 0 : index
    %6 = vector.load %arg4[%c0_7, %c0_8] : memref<1x32xf32, #tpu.memory_space<vmem>>, vector<1x32xf32>
    %7 = vector.broadcast %6 : vector<1x32xf32> to vector<128x32xf32>
    %8 = arith.addf %5, %7 : vector<128x32xf32>
    %9 = math.tanh %8 : vector<128x32xf32>
    %c0_9 = arith.constant 0 : index
    %c0_10 = arith.constant 0 : index
    %10 = vector.load %arg5[%c0_9, %c0_10] : memref<32x32xf32, #tpu.memory_space<vmem>>, vector<32x32xf32>
    %cst_11 = arith.constant dense<0.000000e+00> : vector<128x32xf32>
    %11 = tpu.matmul %9, %10, %cst_11 {dimension_numbers = #tpu.dot_dimension_numbers<[1], [0], [0], [1], [0, 0, 1, 1], [], []>} : vector<128x32xf32>, vector<32x32xf32>, vector<128x32xf32> -> vector<128x32xf32>
    %c0_12 = arith.constant 0 : index
    %c0_13 = arith.constant 0 : index
    %12 = vector.load %arg6[%c0_12, %c0_13] : memref<1x32xf32, #tpu.memory_space<vmem>>, vector<1x32xf32>
    %13 = vector.broadcast %12 : vector<1x32xf32> to vector<128x32xf32>
    %14 = arith.addf %11, %13 : vector<128x32xf32>
    %15 = math.tanh %14 : vector<128x32xf32>
    %c0_14 = arith.constant 0 : index
    %c0_15 = arith.constant 0 : index
    %16 = vector.load %arg9[%c0_14, %c0_15] : memref<160x32xf32, #tpu.memory_space<vmem>>, vector<160x32xf32>
    %17 = vector.extract_strided_slice %16 {offsets = [0, 0], sizes = [32, 32], strides = [1, 1]} : vector<160x32xf32> to vector<32x32xf32>
    %cst_16 = arith.constant dense<0.000000e+00> : vector<128x32xf32>
    %18 = tpu.matmul %15, %17, %cst_16 {dimension_numbers = #tpu.dot_dimension_numbers<[1], [0], [0], [1], [0, 0, 1, 1], [], []>} : vector<128x32xf32>, vector<32x32xf32>, vector<128x32xf32> -> vector<128x32xf32>
    %c0_17 = arith.constant 0 : index
    %c0_18 = arith.constant 0 : index
    %19 = vector.load %arg10[%c0_17, %c0_18] : memref<1x32xf32, #tpu.memory_space<vmem>>, vector<1x32xf32>
    %20 = vector.broadcast %19 : vector<1x32xf32> to vector<128x32xf32>
    %21 = arith.addf %18, %20 : vector<128x32xf32>
    %22 = vector.shape_cast %15 : vector<128x32xf32> to vector<8x16x32xf32>
    "tpu.trace_start"() <{level = 10 : i32, message = "bmn,bnh->bmh"}> : () -> ()
    %cst_19 = arith.constant dense<0.000000e+00> : vector<8x16x32xf32>
    %23 = tpu.matmul %0, %22, %cst_19 {dimension_numbers = #tpu.dot_dimension_numbers<[2], [1], [1], [2], [0, 0, 0, 1, 1, 2], [0], [0]>} : vector<8x16x16xf32>, vector<8x16x32xf32>, vector<8x16x32xf32> -> vector<8x16x32xf32>
    "tpu.trace_stop"() : () -> ()
    %24 = vector.shape_cast %23 : vector<8x16x32xf32> to vector<128x32xf32>
    %c0_20 = arith.constant 0 : index
    %c0_21 = arith.constant 0 : index
    %c0_22 = arith.constant 0 : index
    %25 = vector.load %arg7[%c0_20, %c0_21, %c0_22] : memref<4x32x32xf32, #tpu.memory_space<vmem>>, vector<1x32x32xf32>
    %26 = vector.shape_cast %25 : vector<1x32x32xf32> to vector<32x32xf32>
    %cst_23 = arith.constant dense<0.000000e+00> : vector<128x32xf32>
    %27 = tpu.matmul %24, %26, %cst_23 {dimension_numbers = #tpu.dot_dimension_numbers<[1], [0], [0], [1], [0, 0, 1, 1], [], []>} : vector<128x32xf32>, vector<32x32xf32>, vector<128x32xf32> -> vector<128x32xf32>
    %c0_24 = arith.constant 0 : index
    %c0_25 = arith.constant 0 : index
    %c0_26 = arith.constant 0 : index
    %28 = vector.load %arg8[%c0_24, %c0_25, %c0_26] : memref<4x1x32xf32, #tpu.memory_space<vmem>>, vector<1x1x32xf32>
    %29 = vector.shape_cast %28 : vector<1x1x32xf32> to vector<1x32xf32>
    %30 = vector.broadcast %29 : vector<1x32xf32> to vector<128x32xf32>
    %31 = arith.addf %27, %30 : vector<128x32xf32>
    %32 = vector.shape_cast %31 : vector<128x32xf32> to vector<8x16x32xf32>
    "tpu.trace_start"() <{level = 10 : i32, message = "bnm,bmh->bnh"}> : () -> ()
    %cst_27 = arith.constant dense<0.000000e+00> : vector<8x16x32xf32>
    %33 = tpu.matmul %1, %32, %cst_27 {dimension_numbers = #tpu.dot_dimension_numbers<[2], [1], [1], [2], [0, 0, 0, 1, 1, 2], [0], [0]>} : vector<8x16x16xf32>, vector<8x16x32xf32>, vector<8x16x32xf32> -> vector<8x16x32xf32>
    "tpu.trace_stop"() : () -> ()
    %34 = math.tanh %33 : vector<8x16x32xf32>
    %35 = vector.shape_cast %34 : vector<8x16x32xf32> to vector<128x32xf32>
    %36 = vector.extract_strided_slice %16 {offsets = [32, 0], sizes = [32, 32], strides = [1, 1]} : vector<160x32xf32> to vector<32x32xf32>
    %cst_28 = arith.constant dense<0.000000e+00> : vector<128x32xf32>
    %37 = tpu.matmul %35, %36, %cst_28 {dimension_numbers = #tpu.dot_dimension_numbers<[1], [0], [0], [1], [0, 0, 1, 1], [], []>} : vector<128x32xf32>, vector<32x32xf32>, vector<128x32xf32> -> vector<128x32xf32>
    %38 = arith.addf %21, %37 : vector<128x32xf32>
    "tpu.trace_start"() <{level = 10 : i32, message = "bmn,bnh->bmh"}> : () -> ()
    %cst_29 = arith.constant dense<0.000000e+00> : vector<8x16x32xf32>
    %39 = tpu.matmul %0, %34, %cst_29 {dimension_numbers = #tpu.dot_dimension_numbers<[2], [1], [1], [2], [0, 0, 0, 1, 1, 2], [0], [0]>} : vector<8x16x16xf32>, vector<8x16x32xf32>, vector<8x16x32xf32> -> vector<8x16x32xf32>
    "tpu.trace_stop"() : () -> ()
    %40 = vector.shape_cast %39 : vector<8x16x32xf32> to vector<128x32xf32>
    %c1 = arith.constant 1 : index
    %c0_30 = arith.constant 0 : index
    %c0_31 = arith.constant 0 : index
    %41 = vector.load %arg7[%c1, %c0_30, %c0_31] : memref<4x32x32xf32, #tpu.memory_space<vmem>>, vector<1x32x32xf32>
    %42 = vector.shape_cast %41 : vector<1x32x32xf32> to vector<32x32xf32>
    %cst_32 = arith.constant dense<0.000000e+00> : vector<128x32xf32>
    %43 = tpu.matmul %40, %42, %cst_32 {dimension_numbers = #tpu.dot_dimension_numbers<[1], [0], [0], [1], [0, 0, 1, 1], [], []>} : vector<128x32xf32>, vector<32x32xf32>, vector<128x32xf32> -> vector<128x32xf32>
    %c1_33 = arith.constant 1 : index
    %c0_34 = arith.constant 0 : index
    %c0_35 = arith.constant 0 : index
    %44 = vector.load %arg8[%c1_33, %c0_34, %c0_35] : memref<4x1x32xf32, #tpu.memory_space<vmem>>, vector<1x1x32xf32>
    %45 = vector.shape_cast %44 : vector<1x1x32xf32> to vector<1x32xf32>
    %46 = vector.broadcast %45 : vector<1x32xf32> to vector<128x32xf32>
    %47 = arith.addf %43, %46 : vector<128x32xf32>
    %48 = vector.shape_cast %47 : vector<128x32xf32> to vector<8x16x32xf32>
    "tpu.trace_start"() <{level = 10 : i32, message = "bnm,bmh->bnh"}> : () -> ()
    %cst_36 = arith.constant dense<0.000000e+00> : vector<8x16x32xf32>
    %49 = tpu.matmul %1, %48, %cst_36 {dimension_numbers = #tpu.dot_dimension_numbers<[2], [1], [1], [2], [0, 0, 0, 1, 1, 2], [0], [0]>} : vector<8x16x16xf32>, vector<8x16x32xf32>, vector<8x16x32xf32> -> vector<8x16x32xf32>
    "tpu.trace_stop"() : () -> ()
    %50 = math.tanh %49 : vector<8x16x32xf32>
    %51 = vector.shape_cast %50 : vector<8x16x32xf32> to vector<128x32xf32>
    %52 = vector.extract_strided_slice %16 {offsets = [64, 0], sizes = [32, 32], strides = [1, 1]} : vector<160x32xf32> to vector<32x32xf32>
    %cst_37 = arith.constant dense<0.000000e+00> : vector<128x32xf32>
    %53 = tpu.matmul %51, %52, %cst_37 {dimension_numbers = #tpu.dot_dimension_numbers<[1], [0], [0], [1], [0, 0, 1, 1], [], []>} : vector<128x32xf32>, vector<32x32xf32>, vector<128x32xf32> -> vector<128x32xf32>
    %54 = arith.addf %38, %53 : vector<128x32xf32>
    "tpu.trace_start"() <{level = 10 : i32, message = "bmn,bnh->bmh"}> : () -> ()
    %cst_38 = arith.constant dense<0.000000e+00> : vector<8x16x32xf32>
    %55 = tpu.matmul %0, %50, %cst_38 {dimension_numbers = #tpu.dot_dimension_numbers<[2], [1], [1], [2], [0, 0, 0, 1, 1, 2], [0], [0]>} : vector<8x16x16xf32>, vector<8x16x32xf32>, vector<8x16x32xf32> -> vector<8x16x32xf32>
    "tpu.trace_stop"() : () -> ()
    %56 = vector.shape_cast %55 : vector<8x16x32xf32> to vector<128x32xf32>
    %c2 = arith.constant 2 : index
    %c0_39 = arith.constant 0 : index
    %c0_40 = arith.constant 0 : index
    %57 = vector.load %arg7[%c2, %c0_39, %c0_40] : memref<4x32x32xf32, #tpu.memory_space<vmem>>, vector<1x32x32xf32>
    %58 = vector.shape_cast %57 : vector<1x32x32xf32> to vector<32x32xf32>
    %cst_41 = arith.constant dense<0.000000e+00> : vector<128x32xf32>
    %59 = tpu.matmul %56, %58, %cst_41 {dimension_numbers = #tpu.dot_dimension_numbers<[1], [0], [0], [1], [0, 0, 1, 1], [], []>} : vector<128x32xf32>, vector<32x32xf32>, vector<128x32xf32> -> vector<128x32xf32>
    %c2_42 = arith.constant 2 : index
    %c0_43 = arith.constant 0 : index
    %c0_44 = arith.constant 0 : index
    %60 = vector.load %arg8[%c2_42, %c0_43, %c0_44] : memref<4x1x32xf32, #tpu.memory_space<vmem>>, vector<1x1x32xf32>
    %61 = vector.shape_cast %60 : vector<1x1x32xf32> to vector<1x32xf32>
    %62 = vector.broadcast %61 : vector<1x32xf32> to vector<128x32xf32>
    %63 = arith.addf %59, %62 : vector<128x32xf32>
    %64 = vector.shape_cast %63 : vector<128x32xf32> to vector<8x16x32xf32>
    "tpu.trace_start"() <{level = 10 : i32, message = "bnm,bmh->bnh"}> : () -> ()
    %cst_45 = arith.constant dense<0.000000e+00> : vector<8x16x32xf32>
    %65 = tpu.matmul %1, %64, %cst_45 {dimension_numbers = #tpu.dot_dimension_numbers<[2], [1], [1], [2], [0, 0, 0, 1, 1, 2], [0], [0]>} : vector<8x16x16xf32>, vector<8x16x32xf32>, vector<8x16x32xf32> -> vector<8x16x32xf32>
    "tpu.trace_stop"() : () -> ()
    %66 = math.tanh %65 : vector<8x16x32xf32>
    %67 = vector.shape_cast %66 : vector<8x16x32xf32> to vector<128x32xf32>
    %68 = vector.extract_strided_slice %16 {offsets = [96, 0], sizes = [32, 32], strides = [1, 1]} : vector<160x32xf32> to vector<32x32xf32>
    %cst_46 = arith.constant dense<0.000000e+00> : vector<128x32xf32>
    %69 = tpu.matmul %67, %68, %cst_46 {dimension_numbers = #tpu.dot_dimension_numbers<[1], [0], [0], [1], [0, 0, 1, 1], [], []>} : vector<128x32xf32>, vector<32x32xf32>, vector<128x32xf32> -> vector<128x32xf32>
    %70 = arith.addf %54, %69 : vector<128x32xf32>
    "tpu.trace_start"() <{level = 10 : i32, message = "bmn,bnh->bmh"}> : () -> ()
    %cst_47 = arith.constant dense<0.000000e+00> : vector<8x16x32xf32>
    %71 = tpu.matmul %0, %66, %cst_47 {dimension_numbers = #tpu.dot_dimension_numbers<[2], [1], [1], [2], [0, 0, 0, 1, 1, 2], [0], [0]>} : vector<8x16x16xf32>, vector<8x16x32xf32>, vector<8x16x32xf32> -> vector<8x16x32xf32>
    "tpu.trace_stop"() : () -> ()
    %72 = vector.shape_cast %71 : vector<8x16x32xf32> to vector<128x32xf32>
    %c3 = arith.constant 3 : index
    %c0_48 = arith.constant 0 : index
    %c0_49 = arith.constant 0 : index
    %73 = vector.load %arg7[%c3, %c0_48, %c0_49] : memref<4x32x32xf32, #tpu.memory_space<vmem>>, vector<1x32x32xf32>
    %74 = vector.shape_cast %73 : vector<1x32x32xf32> to vector<32x32xf32>
    %cst_50 = arith.constant dense<0.000000e+00> : vector<128x32xf32>
    %75 = tpu.matmul %72, %74, %cst_50 {dimension_numbers = #tpu.dot_dimension_numbers<[1], [0], [0], [1], [0, 0, 1, 1], [], []>} : vector<128x32xf32>, vector<32x32xf32>, vector<128x32xf32> -> vector<128x32xf32>
    %c3_51 = arith.constant 3 : index
    %c0_52 = arith.constant 0 : index
    %c0_53 = arith.constant 0 : index
    %76 = vector.load %arg8[%c3_51, %c0_52, %c0_53] : memref<4x1x32xf32, #tpu.memory_space<vmem>>, vector<1x1x32xf32>
    %77 = vector.shape_cast %76 : vector<1x1x32xf32> to vector<1x32xf32>
    %78 = vector.broadcast %77 : vector<1x32xf32> to vector<128x32xf32>
    %79 = arith.addf %75, %78 : vector<128x32xf32>
    %80 = vector.shape_cast %79 : vector<128x32xf32> to vector<8x16x32xf32>
    "tpu.trace_start"() <{level = 10 : i32, message = "bnm,bmh->bnh"}> : () -> ()
    %cst_54 = arith.constant dense<0.000000e+00> : vector<8x16x32xf32>
    %81 = tpu.matmul %1, %80, %cst_54 {dimension_numbers = #tpu.dot_dimension_numbers<[2], [1], [1], [2], [0, 0, 0, 1, 1, 2], [0], [0]>} : vector<8x16x16xf32>, vector<8x16x32xf32>, vector<8x16x32xf32> -> vector<8x16x32xf32>
    "tpu.trace_stop"() : () -> ()
    %82 = math.tanh %81 : vector<8x16x32xf32>
    %83 = vector.shape_cast %82 : vector<8x16x32xf32> to vector<128x32xf32>
    %84 = vector.extract_strided_slice %16 {offsets = [128, 0], sizes = [32, 32], strides = [1, 1]} : vector<160x32xf32> to vector<32x32xf32>
    %cst_55 = arith.constant dense<0.000000e+00> : vector<128x32xf32>
    %85 = tpu.matmul %83, %84, %cst_55 {dimension_numbers = #tpu.dot_dimension_numbers<[1], [0], [0], [1], [0, 0, 1, 1], [], []>} : vector<128x32xf32>, vector<32x32xf32>, vector<128x32xf32> -> vector<128x32xf32>
    %86 = arith.addf %70, %85 : vector<128x32xf32>
    %87 = math.tanh %86 : vector<128x32xf32>
    %88 = vector.shape_cast %87 : vector<128x32xf32> to vector<8x16x32xf32>
    %cst_56 = arith.constant dense<0.000000e+00> : vector<8x32xf32>
    %89 = vector.multi_reduction <add>, %88, %cst_56 [1] : vector<8x16x32xf32> to vector<8x32xf32>
    %c0_57 = arith.constant 0 : index
    %c0_58 = arith.constant 0 : index
    %90 = vector.load %arg11[%c0_57, %c0_58] : memref<32x3xf32, #tpu.memory_space<vmem>>, vector<32x3xf32>
    %cst_59 = arith.constant dense<0.000000e+00> : vector<8x3xf32>
    %91 = tpu.matmul %89, %90, %cst_59 {dimension_numbers = #tpu.dot_dimension_numbers<[1], [0], [0], [1], [0, 0, 1, 1], [], []>} : vector<8x32xf32>, vector<32x3xf32>, vector<8x3xf32> -> vector<8x3xf32>
    %c0_60 = arith.constant 0 : index
    %c0_61 = arith.constant 0 : index
    %92 = vector.load %arg12[%c0_60, %c0_61] : memref<1x3xf32, #tpu.memory_space<vmem>>, vector<1x3xf32>
    %93 = vector.broadcast %92 : vector<1x3xf32> to vector<8x3xf32>
    %94 = arith.addf %91, %93 : vector<8x3xf32>
    %cst_62 = arith.constant dense<0xFF800000> : vector<8xf32>
    %95 = vector.multi_reduction <maximumf>, %94, %cst_62 [1] : vector<8x3xf32> to vector<8xf32>
    %96 = vector.shape_cast %95 : vector<8xf32> to vector<8x1xf32>
    %97 = vector.broadcast %96 : vector<8x1xf32> to vector<8x3xf32>
    %98 = arith.subf %94, %97 : vector<8x3xf32>
    %99 = math.exp %98 : vector<8x3xf32>
    %cst_63 = arith.constant dense<0.000000e+00> : vector<8xf32>
    %100 = vector.multi_reduction <add>, %99, %cst_63 [1] : vector<8x3xf32> to vector<8xf32>
    %101 = vector.shape_cast %100 : vector<8xf32> to vector<8x1xf32>
    %102 = vector.broadcast %101 : vector<8x1xf32> to vector<8x3xf32>
    %103 = arith.divf %99, %102 : vector<8x3xf32>
    %c0_64 = arith.constant 0 : index
    %c0_65 = arith.constant 0 : index
    %104 = vector.load %arg13[%c0_64, %c0_65] : memref<8x3xf32, #tpu.memory_space<vmem>>, vector<8x3xf32>
    tpu.vector_store %arg13[%c0_64, %c0_65], %103 {strides = array<i32>} : memref<8x3xf32, #tpu.memory_space<vmem>>, vector<8x3xf32>,
    return
  }
  func.func @transform_0(%arg0: i32) -> (i32, i32, i32) {
    %c0_i32 = arith.constant 0 : i32
    %c0_i32_0 = arith.constant 0 : i32
    %c0_i32_1 = arith.constant 0 : i32
    return %arg0, %c0_i32, %c0_i32_0 : i32, i32, i32
  }
  func.func @transform_1(%arg0: i32) -> (i32, i32, i32) {
    %c0_i32 = arith.constant 0 : i32
    %c0_i32_0 = arith.constant 0 : i32
    %c0_i32_1 = arith.constant 0 : i32
    return %arg0, %c0_i32, %c0_i32_0 : i32, i32, i32
  }
  func.func @transform_2(%arg0: i32) -> (i32, i32) {
    %c0_i32 = arith.constant 0 : i32
    %c0_i32_0 = arith.constant 0 : i32
    %c0_i32_1 = arith.constant 0 : i32
    return %c0_i32, %c0_i32_0 : i32, i32
  }
  func.func @transform_3(%arg0: i32) -> (i32, i32) {
    %c0_i32 = arith.constant 0 : i32
    %c0_i32_0 = arith.constant 0 : i32
    %c0_i32_1 = arith.constant 0 : i32
    return %c0_i32, %c0_i32_0 : i32, i32
  }
  func.func @transform_4(%arg0: i32) -> (i32, i32) {
    %c0_i32 = arith.constant 0 : i32
    %c0_i32_0 = arith.constant 0 : i32
    %c0_i32_1 = arith.constant 0 : i32
    return %c0_i32, %c0_i32_0 : i32, i32
  }
  func.func @transform_5(%arg0: i32) -> (i32, i32) {
    %c0_i32 = arith.constant 0 : i32
    %c0_i32_0 = arith.constant 0 : i32
    %c0_i32_1 = arith.constant 0 : i32
    return %c0_i32, %c0_i32_0 : i32, i32
  }
  func.func @transform_6(%arg0: i32) -> (i32, i32, i32) {
    %c0_i32 = arith.constant 0 : i32
    %c0_i32_0 = arith.constant 0 : i32
    %c0_i32_1 = arith.constant 0 : i32
    %c0_i32_2 = arith.constant 0 : i32
    return %c0_i32, %c0_i32_0, %c0_i32_1 : i32, i32, i32
  }
  func.func @transform_7(%arg0: i32) -> (i32, i32, i32) {
    %c0_i32 = arith.constant 0 : i32
    %c0_i32_0 = arith.constant 0 : i32
    %c0_i32_1 = arith.constant 0 : i32
    %c0_i32_2 = arith.constant 0 : i32
    return %c0_i32, %c0_i32_0, %c0_i32_1 : i32, i32, i32
  }
  func.func @transform_8(%arg0: i32) -> (i32, i32) {
    %c0_i32 = arith.constant 0 : i32
    %c0_i32_0 = arith.constant 0 : i32
    %c0_i32_1 = arith.constant 0 : i32
    return %c0_i32, %c0_i32_0 : i32, i32
  }
  func.func @transform_9(%arg0: i32) -> (i32, i32) {
    %c0_i32 = arith.constant 0 : i32
    %c0_i32_0 = arith.constant 0 : i32
    %c0_i32_1 = arith.constant 0 : i32
    return %c0_i32, %c0_i32_0 : i32, i32
  }
  func.func @transform_10(%arg0: i32) -> (i32, i32) {
    %c0_i32 = arith.constant 0 : i32
    %c0_i32_0 = arith.constant 0 : i32
    %c0_i32_1 = arith.constant 0 : i32
    return %c0_i32, %c0_i32_0 : i32, i32
  }
  func.func @transform_11(%arg0: i32) -> (i32, i32) {
    %c0_i32 = arith.constant 0 : i32
    %c0_i32_0 = arith.constant 0 : i32
    %c0_i32_1 = arith.constant 0 : i32
    return %c0_i32, %c0_i32_0 : i32, i32
  }
  func.func @transform_12(%arg0: i32) -> (i32, i32) {
    %c0_i32 = arith.constant 0 : i32
    %c0_i32_0 = arith.constant 0 : i32
    return %arg0, %c0_i32 : i32, i32
  }
}

</mosaic_0001>

<bundles_post_ra>
// kernel: wavelet_network_pallas.1
= control target key start
LH: loop header
LB: loop body
LE: loop exit
PB: predicated region body
PF: predicated region fallthrough
CT: control target
= control target key end

     0   :  { %s10666_s21 = smov 0   ;;  %s11527_s0 = inlined_call_operand.vmem [shape: f32[16,16,16], index: 0, kind: input, shape index: {}]   ;;  %s11528_s1 = inlined_call_operand.vmem [shape: f32[16,16,4], index: 1, kind: input, shape index: {}]   ;;  %s11529_s2 = inlined_call_operand.vmem [shape: f32[4,32], index: 2, kind: input, shape index: {}]   ;;  %s11530_s3 = inlined_call_operand.vmem [shape: f32[1,32], index: 3, kind: input, shape index: {}]   ;;  %s11531_s4 = inlined_call_operand.vmem [shape: f32[32,32], index: 4, kind: input, shape index: {}]   ;;  %s11532_s5 = inlined_call_operand.vmem [shape: f32[1,32], index: 5, kind: input, shape index: {}]   ;;  %s11533_s6 = inlined_call_operand.vmem [shape: f32[4,32,32], index: 6, kind: input, shape index: {}]   ;;  %s11534_s7 = inlined_call_operand.vmem [shape: f32[4,1,32], index: 7, kind: input, shape index: {}]   ;;  %s11535_s8 = inlined_call_operand.vmem [shape: f32[160,32], index: 8, kind: input, shape index: {}]   ;;  %s11536_s9 = inlined_call_operand.vmem [shape: f32[1,32], index: 9, kind: input, shape index: {}]   ;;  %s11537_s10 = inlined_call_operand.vmem [shape: f32[32,3], index: 10, kind: input, shape index: {}]   ;;  %s11538_s11 = inlined_call_operand.vmem [shape: f32[1,3], index: 11, kind: input, shape index: {}]   ;;  %s11539_s12 = inlined_call_operand.vmem [shape: f32[16,3], index: 12, kind: output, shape index: {}]  }
   0x1 LB: > { %s10672_s22 = sadd.s32 4294967295, %s10596_s21   ;;  %p8287_p0 = scmp.ge.s32.totalorder %s10596_s21, 1  ;;  %s10596_s21 = sphi %s10666_s21, %s22_s21  }
   0x2   : > { %p376_p1 = scmp.lt.s32.totalorder %s10596_s21, 3 }
   0x4   : > { %p377_p2 = pnand %p8287_p0, %p376_p1 }
   0x5   : > { %v730_v0 = vld [vmem:[%s11529_s2] sm:$0xf] (!%p377_p2)  ;;  %vm787_vm0 = vcmask (!%p377_p2), 1043456   ;;  %s8288_s25 = sshll.u32 (!%p377_p2), %s10672_s22, 3  ;;  %vm738_vm1 = vcmask (!%p377_p2), 31744   ;;  %v953_v18 = vld [vmem:[%s11531_s4 + $0x8] sm:$0xff] (!%p377_p2) }
   0x6   : > { %380 = sbr.rel (%p377_p2) target bundleno = 3932 (0xf5c), region = 68  ;;  %9106 = vmatprep.subr.msk.mxu0 (!%p377_p2), %vm787_vm0, %v730_v0  ;;  %p425_p3 = scmp.lt.s32.totalorder (!%p377_p2), %s8288_s25, 15  ;;  %10253 = vmatprep.subr.msk.mxu1 (!%p377_p2), %vm787_vm0, %v730_v0  ;;  %v952_v17 = vld [vmem:[%s11531_s4] sm:$0xff] (!%p377_p2)  ;;  %v954_v20 = vld [vmem:[%s11531_s4 + $0x10] sm:$0xff] (!%p377_p2)  ;;  %v955_v21 = vld [vmem:[%s11531_s4 + $0x18] sm:$0xff] (!%p377_p2)  ;;  %vm963_vm2 = vcmask (!%p377_p2), 261120  }
   0x7   : > { %9107 = vmatpush3.msk.msra.mxu0 (!%p377_p2), %vm787_vm0, %v730_v0  ;;  %10254 = vmatpush3.msk.msra.mxu1 (!%p377_p2), %vm787_vm0, %v730_v0  ;;  %v9911_v19 = vpack.c.bf16 (!%p377_p2), %v953_v18, %v952_v17  ;;  %v9915_v22 = vpack.c.bf16 (!%p377_p2), %v955_v21, %v954_v20  ;;  %v10719_v23 = vld [vmem:[%s11530_s3] ss:$0 sm:$0xff] (!%p377_p2)  ;;  %vm1393_vm3 = vcmask (!%p377_p2), 130048   ;;  %vm10599_vm4 = vmmov (!%p377_p2), 0   ;;  %p438_p4 = scmp.lt.s32.totalorder (!%p377_p2), %s10672_s22, 1 }
   0x8   : > { %vm8119_vm5 = vcmask (!%p377_p2), 1041409   ;;  %vm8121_vm6 = vcmask (!%p377_p2), 1042434   ;;  %vm8123_vm7 = vcmask (!%p377_p2), 1043459   ;;  %vm8125_vm8 = vcmask (!%p377_p2), 1044484  }
   0x9   : > { %9912 = vmatprep.subr.bf16.mxu1 (!%p377_p2), %v9911_v19  ;;  %vm8127_vm9 = vcmask (!%p377_p2), 1045509   ;;  %vm8129_vm10 = vcmask (!%p377_p2), 1046534   ;;  %vm8131_vm11 = vcmask (!%p377_p2), 1047559   ;;  %vm8205_vm12 = vcmask (!%p377_p2), 23552  }
   0xd   : > { %s11541_s25 = smov (!%p425_p3, %s8288_s25), 15  ;;  %s11543_s22 = smov (!%p438_p4, %s10672_s22), 1 }
   0xe   : > { %s8626_s26 = sshll.u32 %s11541_s25, 4 }
   0xf   : > { %s436_s29 = scalar_lea.vmem %s11528_s1, %s8626_s26  ;;  %s10770_s18 = scalar_lea.vmem %s11527_s0, %s8626_s26 }
  0x10   : > { %v714_v1 = vld [vmem:[%s436_s29] sm:$0xff]  ;;  %v715_v2 = vld [vmem:[%s436_s29 + $0x8] sm:$0xff]  ;;  %v716_v3 = vld [vmem:[%s436_s29 + $0x10] sm:$0xff] }
  0x11   : > { %9108 = vmatprep.mubr.msk.f32.mxu0 %vm738_vm1, %v714_v1  ;;  %v722_v4 = vld [vmem:[%s436_s29 + $0x40] sm:$0xff]  ;;  %v717_v5 = vld [vmem:[%s436_s29 + $0x18] sm:$0xff]  ;;  %v723_v6 = vld [vmem:[%s436_s29 + $0x48] sm:$0xff] }
  0x12   : > { %9109 = vmatmul.mubr.msk.f32.vlgmr.msra.gmra.mrb[0].mxu0 %vm738_vm1, %v715_v2  ;;  %9120 = vmatprep.mubr.msk.f32.mxu1 %vm738_vm1, %v722_v4  ;;  %v724_v7 = vld [vmem:[%s436_s29 + $0x50] sm:$0xff]  ;;  %v718_v8 = vld [vmem:[%s436_s29 + $0x20] sm:$0xff]  ;;  %v725_v9 = vld [vmem:[%s436_s29 + $0x58] sm:$0xff] }
  0x13   : > { %9111 = vmatprep.mubr.msk.f32.mxu0 %vm738_vm1, %v716_v3  ;;  %9121 = vmatmul.mubr.msk.f32.vlgmr.msra.gmra.mrb[0].mxu1 %vm738_vm1, %v723_v6  ;;  %v726_v10 = vld [vmem:[%s436_s29 + $0x60] sm:$0xff]  ;;  %v719_v11 = vld [vmem:[%s436_s29 + $0x28] sm:$0xff]  ;;  %v720_v12 = vld [vmem:[%s436_s29 + $0x30] sm:$0xff] }
  0x14   : > { %9123 = vmatprep.mubr.msk.f32.mxu1 %vm738_vm1, %v724_v7  ;;  %v727_v13 = vld [vmem:[%s436_s29 + $0x68] sm:$0xff]  ;;  %v728_v14 = vld [vmem:[%s436_s29 + $0x70] sm:$0xff]  ;;  %v721_v15 = vld [vmem:[%s436_s29 + $0x38] sm:$0xff]  ;;  %9914 = vmatpush3.bf16.msra.mxu1 %v9911_v19 }
  0x15   : > { %v729_v16 = vld [vmem:[%s436_s29 + $0x78] sm:$0xff]  ;;  %9916 = vmatprep.subr.bf16.mxu1 %v9915_v22  ;;  %v10790_v18 = vld [vmem:[%s10770_s18 + $0x20] sm:$0xff]  ;;  %v10795_v19 = vld [vmem:[%s10770_s18 + $0x28] sm:$0xff]  ;;  %s8294_s29 = sshll.u32 %s11543_s22, 3 }
  0x16   : > { %9112 = vmatmul.mubr.msk.f32.gmra.mrb[2].mxu0 %vm738_vm1, %v717_v5  ;;  %v10787_v17 = vld [vmem:[%s10770_s18 + $0x18] sm:$0xff]  ;;  %v10798_v20 = vld [vmem:[%s10770_s18 + $0x30] sm:$0xff]  ;;  %s441_s14 = scalar_lea.vmem %s11539_s12, %s8294_s29 }
  0x17   : > { %9114 = vmatprep.mubr.msk.f32.mxu0 %vm738_vm1, %v718_v8  ;;  %9124 = vmatmul.mubr.msk.f32.gmra.mrb[2].mxu1 %vm738_vm1, %v725_v9  ;;  %v1173_v8 = vld [vmem:[%s11535_s8] sm:$0xff]  ;;  %v1174_v9 = vld [vmem:[%s11535_s8 + $0x8] sm:$0xff]  ;;  %v10803_v21 = vld [vmem:[%s10770_s18 + $0x38] sm:$0xff] }
  0x18   : > { %9126 = vmatprep.mubr.msk.f32.mxu1 %vm738_vm1, %v726_v10  ;;  %9918 = vmatpush3.bf16.msra.mxu1 %v9915_v22  ;;  %v9919_v10 = vpack.c.bf16 %v1174_v9, %v1173_v8  ;;  %v10806_v22 = vld [vmem:[%s10770_s18 + $0x40] sm:$0xff] }
  0x1a   : > { %9115 = vmatmul.mubr.msk.f32.gmra.mrb[4].mxu0 %vm738_vm1, %v719_v11  ;;  %9920 = vmatprep.subr.bf16.mxu0 %v9919_v10  ;;  %v1175_v11 = vld [vmem:[%s11535_s8 + $0x10] sm:$0xff] }
  0x1b   : > { %9117 = vmatprep.mubr.msk.f32.mxu0 %vm738_vm1, %v720_v12  ;;  %9127 = vmatmul.mubr.msk.f32.gmra.mrb[4].mxu1 %vm738_vm1, %v727_v13  ;;  %v1176_v12 = vld [vmem:[%s11535_s8 + $0x18] sm:$0xff] }
  0x1c   : > { %9129 = vmatprep.mubr.msk.f32.mxu1 %vm738_vm1, %v728_v14  ;;  %9922 = vmatpush3.bf16.msra.mxu0 %v9919_v10  ;;  %v9923_v13 = vpack.c.bf16 %v1176_v12, %v1175_v11  ;;  %v10773_v14 = vld [vmem:[%s10770_s18] sm:$0xff] }
  0x1d   : > { %458 = vxpose.xlu0.b32.start [1/2] (short) (narrow) %v10773_v14, 16 }
  0x1e   : > { %9118 = vmatmul.mubr.msk.f32.gmra.mrb[6].mxu0 %vm738_vm1, %v721_v15  ;;  %9924 = vmatprep.subr.bf16.mxu0 %v9923_v13  ;;  %v10779_v15 = vld [vmem:[%s10770_s18 + $0x8] sm:$0xff] }
  0x1f   : > { %9130 = vmatmul.mubr.msk.f32.gmra.mrb[6].mxu1 %vm738_vm1, %v729_v16  ;;  %v10782_v16 = vld [vmem:[%s10770_s18 + $0x10] sm:$0xff] }
  0x20   : > { %9926 = vmatpush3.bf16.msra.mxu0 %v9923_v13  ;;  %490 = vxpose.xlu1.b32.start [1/2] (short) (narrow) %v10782_v16, 16 }
  0x21   : > { %459 = vxpose.xlu0.b32.end [2/2] (short) (narrow) %v10779_v15, 16 }
  0x24   : > { %491 = vxpose.xlu1.b32.end [2/2] (short) (narrow) %v10787_v17, 16 }
  0x25   : > { %522 = vxpose.xlu0.b32.start [1/2] (short) (narrow) %v10790_v18, 16 }
  0x28   : > { %554 = vxpose.xlu1.b32.start [1/2] (short) (narrow) %v10798_v20, 16 }
  0x29   : > { %523 = vxpose.xlu0.b32.end [2/2] (short) (narrow) %v10795_v19, 16 }
  0x2c   : > { %555 = vxpose.xlu1.b32.end [2/2] (short) (narrow) %v10803_v21, 16 }
  0x2d   : > { %586 = vxpose.xlu0.b32.start [1/2] (short) (narrow) %v10806_v22, 16 }
  0xe5   : > { %v9110_v24 = vpop.f32.mrb[0].mxu0 }
  0xe6   : > { %v863_v25 = vadd.f32 %v9110_v24, %v10719_v23  ;;  %v857_v26 = vpop.f32.mrb[1].mxu0  ;;  %v9122_v28 = vpop.f32.mrb[0].mxu1  ;;  %v10814_v24 = vld [vmem:[%s10770_s18 + $0x50] sm:$0xff] }
  0xe7   : > { %v858_v27 = vadd.f32 %v10719_v23, %v857_v26  ;;  %v897_v29 = vpop.f32.mrb[1].mxu1  ;;  %v903_v52 = vadd.f32 %v9122_v28, %v10719_v23  ;;  %618 = vxpose.xlu1.b32.start [1/2] (short) (narrow) %v10814_v24, 16  ;;  %v10822_v26 = vld [vmem:[%s10770_s18 + $0x60] sm:$0xff]  ;;  %v10830_v28 = vld [vmem:[%s10770_s18 + $0x70] sm:$0xff] }
  0xe8   : > { %v898_v41 = vadd.f32 %v10719_v23, %v897_v29  ;;  %v10835_v29 = vld [vmem:[%s10770_s18 + $0x78] sm:$0xff] }
  0xe9   : > { %10346 = vtanh.f32 %v858_v27  ;;  %v9113_v30 = vpop.f32.mrb[2].mxu0  ;;  %v10827_v27 = vld [vmem:[%s10770_s18 + $0x68] sm:$0xff] }
  0xea   : > { %10348 = vtanh.f32 %v863_v25  ;;  %v873_v31 = vadd.f32 %v9113_v30, %v10719_v23  ;;  %v867_v32 = vpop.f32.mrb[3].mxu0  ;;  %v9125_v34 = vpop.f32.mrb[2].mxu1  ;;  %v10819_v25 = vld [vmem:[%s10770_s18 + $0x58] sm:$0xff]  ;;  %v10841_v30 = vld [vmem:[%s11532_s5] ss:$0 sm:$0xff] }
  0xeb   : > { %v868_v33 = vadd.f32 %v10719_v23, %v867_v32  ;;  %v907_v35 = vpop.f32.mrb[3].mxu1  ;;  %v913_v56 = vadd.f32 %v9125_v34, %v10719_v23  ;;  %619 = vxpose.xlu1.b32.end [2/2] (short) (narrow) %v10819_v25, 16 }
  0xec   : > { %v908_v51 = vadd.f32 %v10719_v23, %v907_v35 }
  0xed   : > { %10350 = vtanh.f32 %v868_v33  ;;  %v9116_v36 = vpop.f32.mrb[4].mxu0 }
  0xee   : > { %10352 = vtanh.f32 %v873_v31  ;;  %v883_v37 = vadd.f32 %v9116_v36, %v10719_v23  ;;  %v877_v38 = vpop.f32.mrb[5].mxu0  ;;  %v9128_v40 = vpop.f32.mrb[4].mxu1 }
  0xef   : > { %v878_v39 = vadd.f32 %v10719_v23, %v877_v38  ;;  %v917_v42 = vpop.f32.mrb[5].mxu1  ;;  %v923_v61 = vadd.f32 %v9128_v40, %v10719_v23  ;;  %682 = vxpose.xlu1.b32.start [1/2] (short) (narrow) %v10830_v28, 16 }
  0xf0   : > { %v918_v55 = vadd.f32 %v10719_v23, %v917_v42 }
  0xf1   : > { %10354 = vtanh.f32 %v878_v39  ;;  %v9119_v43 = vpop.f32.mrb[6].mxu0 }
  0xf2   : > { %10356 = vtanh.f32 %v883_v37  ;;  %v893_v44 = vadd.f32 %v9119_v43, %v10719_v23  ;;  %v887_v45 = vpop.f32.mrb[7].mxu0  ;;  %v9131_v48 = vpop.f32.mrb[6].mxu1 }
  0xf3   : > { %v10347_v46 = vpop.eup %10346  ;;  %v888_v47 = vadd.f32 %v10719_v23, %v887_v45  ;;  %10358 = vtanh.f32 %v898_v41  ;;  %v927_v50 = vpop.f32.mrb[7].mxu1  ;;  %v933_v0 = vadd.f32 %v9131_v48, %v10719_v23  ;;  %683 = vxpose.xlu1.b32.end [2/2] (short) (narrow) %v10835_v29, 16 }
  0xf4   : > { %v10349_v49 = vpop.eup %10348  ;;  %9140 = vmatprep.mubr.msk.f32.mxu1 %vm963_vm2, %v10347_v46  ;;  %v928_v59 = vadd.f32 %v10719_v23, %v927_v50  ;;  %v10811_v23 = vld [vmem:[%s10770_s18 + $0x48] sm:$0xff] }
  0xf5   : > { %10360 = vtanh.f32 %v888_v47  ;;  %9141 = vmatmul.mubr.msk.f32.vlgmr.msra.gmra.mrb[8].mxu1 %vm963_vm2, %v10349_v49  ;;  %587 = vxpose.xlu0.b32.end [2/2] (short) (narrow) %v10811_v23, 16 }
  0xf6   : > { %10362 = vtanh.f32 %v893_v44 }
  0xf7   : > { %v10351_v53 = vpop.eup %10350  ;;  %10364 = vtanh.f32 %v908_v51 }
  0xf8   : > { %v10353_v54 = vpop.eup %10352  ;;  %9143 = vmatprep.mubr.msk.f32.mxu1 %vm963_vm2, %v10351_v53  ;;  %10366 = vtanh.f32 %v903_v52 }
  0xf9   : > { %9144 = vmatmul.mubr.msk.f32.gmra.mrb[10].mxu1 %vm963_vm2, %v10353_v54  ;;  %10368 = vtanh.f32 %v918_v55  ;;  %650 = vxpose.xlu0.b32.start [1/2] (short) (narrow) %v10822_v26, 16 }
  0xfa   : > { %10370 = vtanh.f32 %v913_v56 }
  0xfb   : > { %v10355_v57 = vpop.eup %10354  ;;  %10372 = vtanh.f32 %v928_v59 }
  0xfc   : > { %v10357_v58 = vpop.eup %10356  ;;  %9146 = vmatprep.mubr.msk.f32.mxu1 %vm963_vm2, %v10355_v57  ;;  %10374 = vtanh.f32 %v923_v61 }
  0xfd   : > { %9147 = vmatmul.mubr.msk.f32.gmra.mrb[12].mxu1 %vm963_vm2, %v10357_v58  ;;  %v10359_v60 = vpop.eup %10358  ;;  %10376 = vtanh.f32 %v933_v0  ;;  %651 = vxpose.xlu0.b32.end [2/2] (short) (narrow) %v10827_v27, 16 }
  0xff   : > { %v10361_v62 = vpop.eup %10360 }
 0x100   : > { %v10363_v63 = vpop.eup %10362  ;;  %9149 = vmatprep.mubr.msk.f32.mxu1 %vm963_vm2, %v10361_v62 }
 0x101   : > { %9150 = vmatmul.mubr.msk.f32.gmra.mrb[14].mxu1 %vm963_vm2, %v10363_v63  ;;  %v10365_v1 = vpop.eup %10364 }
 0x102   : > { %9152 = vmatprep.mubr.msk.f32.mxu1 %vm963_vm2, %v10359_v60  ;;  %v10367_v2 = vpop.eup %10366 }
 0x103   : > { %v10369_v3 = vpop.eup %10368 }
 0x104   : > { %v10371_v4 = vpop.eup %10370 }
 0x105   : > { %9153 = vmatmul.mubr.msk.f32.gmra.mrb[16].mxu1 %vm963_vm2, %v10367_v2  ;;  %v10373_v5 = vpop.eup %10372 }
 0x106   : > { %9155 = vmatprep.mubr.msk.f32.mxu1 %vm963_vm2, %v10365_v1  ;;  %v10375_v6 = vpop.eup %10374 }
 0x107   : > { %v10377_v7 = vpop.eup %10376 }
 0x109   : > { %9156 = vmatmul.mubr.msk.f32.gmra.mrb[18].mxu1 %vm963_vm2, %v10371_v4 }
 0x10a   : > { %9158 = vmatprep.mubr.msk.f32.mxu1 %vm963_vm2, %v10369_v3 }
 0x10d   : > { %9159 = vmatmul.mubr.msk.f32.gmra.mrb[20].mxu1 %vm963_vm2, %v10375_v6 }
 0x10e   : > { %9161 = vmatprep.mubr.msk.f32.mxu1 %vm963_vm2, %v10373_v5 }
 0x111   : > { %9162 = vmatmul.mubr.msk.f32.gmra.mrb[22].mxu1 %vm963_vm2, %v10377_v7 }
 0x112   : > { %9200 = vmatprep.mubr.msk.f32.mxu1 %vm1393_vm3, %v10773_v14 }
 0x1c8   : > { %v9142_v31 = vpop.f32.mrb[8].mxu1 }
 0x1c9   : > { %v1084_v32 = vadd.f32 %v9142_v31, %v10841_v30  ;;  %v1078_v33 = vpop.f32.mrb[9].mxu1 }
 0x1ca   : > { %v1079_v34 = vadd.f32 %v10841_v30, %v1078_v33  ;;  %v2042_v33 = vld [vmem:[%s11533_s6] sm:$0xff] }
 0x1cb   : > { %10378 = vtanh.f32 %v1084_v32 }
 0x1cc   : > { %10380 = vtanh.f32 %v1079_v34  ;;  %v9145_v35 = vpop.f32.mrb[10].mxu1  ;;  %v2043_v34 = vld [vmem:[%s11533_s6 + $0x8] sm:$0xff] }
 0x1cd   : > { %v1094_v36 = vadd.f32 %v9145_v35, %v10841_v30  ;;  %v1088_v37 = vpop.f32.mrb[11].mxu1 }
 0x1ce   : > { %v1089_v38 = vadd.f32 %v10841_v30, %v1088_v37 }
 0x1cf   : > { %10382 = vtanh.f32 %v1094_v36 }
 0x1d0   : > { %10384 = vtanh.f32 %v1089_v38  ;;  %v9148_v39 = vpop.f32.mrb[12].mxu1  ;;  %v9959_v38 = vpack.c.bf16 %v2043_v34, %v2042_v33 }
 0x1d1   : > { %v1104_v40 = vadd.f32 %v9148_v39, %v10841_v30  ;;  %v1098_v41 = vpop.f32.mrb[13].mxu1 }
 0x1d2   : > { %v1099_v42 = vadd.f32 %v10841_v30, %v1098_v41  ;;  %v2045_v41 = vld [vmem:[%s11533_s6 + $0x18] sm:$0xff] }
 0x1d3   : > { %10386 = vtanh.f32 %v1104_v40  ;;  %v2044_v40 = vld [vmem:[%s11533_s6 + $0x10] sm:$0xff] }
 0x1d4   : > { %10388 = vtanh.f32 %v1099_v42  ;;  %v9151_v43 = vpop.f32.mrb[14].mxu1 }
 0x1d5   : > { %v10379_v44 = vpop.eup %10378  ;;  %v1114_v45 = vadd.f32 %v9151_v43, %v10841_v30  ;;  %v1108_v46 = vpop.f32.mrb[15].mxu1 }
 0x1d6   : > { %v10381_v47 = vpop.eup %10380  ;;  %v1109_v48 = vadd.f32 %v10841_v30, %v1108_v46 }
 0x1d7   : > { %10390 = vtanh.f32 %v1114_v45  ;;  %9172 = vmatprep.mubr.msk.f32.mxu0 %vm963_vm2, %v10381_v47  ;;  %v9927_v49 = vpack.c.bf16 %v10379_v44, %v10381_v47 }
 0x1d8   : > { %10392 = vtanh.f32 %v1109_v48  ;;  %v9154_v50 = vpop.f32.mrb[16].mxu1  ;;  %9173 = vmatmul.mubr.msk.f32.vlgmr.msra.gmra.mrb[8].mxu0 %vm963_vm2, %v10379_v44  ;;  %v9963_v44 = vpack.c.bf16 %v2045_v41, %v2044_v40 }
 0x1d9   : > { %v10383_v51 = vpop.eup %10382  ;;  %v1124_v52 = vadd.f32 %v9154_v50, %v10841_v30  ;;  %v1118_v53 = vpop.f32.mrb[17].mxu1  ;;  %9928 = vmatprep.subr.bf16.mxu1 %v9927_v49 }
 0x1da   : > { %v10385_v54 = vpop.eup %10384  ;;  %v1119_v55 = vadd.f32 %v10841_v30, %v1118_v53  ;;  %9930 = vmatpush3.bf16.msra.mxu1 %v9927_v49 }
 0x1db   : > { %10394 = vtanh.f32 %v1124_v52  ;;  %9175 = vmatprep.mubr.msk.f32.mxu0 %vm963_vm2, %v10385_v54  ;;  %v9931_v56 = vpack.c.bf16 %v10383_v51, %v10385_v54 }
 0x1dc   : > { %10396 = vtanh.f32 %v1119_v55  ;;  %v9157_v57 = vpop.f32.mrb[18].mxu1  ;;  %9176 = vmatmul.mubr.msk.f32.gmra.mrb[10].mxu0 %vm963_vm2, %v10383_v51 }
 0x1dd   : > { %v10387_v58 = vpop.eup %10386  ;;  %v1134_v59 = vadd.f32 %v9157_v57, %v10841_v30  ;;  %v1128_v60 = vpop.f32.mrb[19].mxu1  ;;  %9201 = vmatmul.mubr.msk.f32.vlgmr.msra.gmra.mrb[24].mxu1 %vm1393_vm3, %v10779_v15  ;;  %9932 = vmatprep.subr.bf16.mxu1 %v9931_v56 }
 0x1de   : > { %v10389_v61 = vpop.eup %10388  ;;  %v1129_v62 = vadd.f32 %v10841_v30, %v1128_v60  ;;  %9934 = vmatpush3.bf16.msra.mxu1 %v9931_v56  ;;  %9207 = vmatprep.mubr.msk.f32.mxu1 %vm1393_vm3, %v10782_v16 }
 0x1df   : > { %10398 = vtanh.f32 %v1134_v59  ;;  %9178 = vmatprep.mubr.msk.f32.mxu0 %vm963_vm2, %v10389_v61  ;;  %v9935_v63 = vpack.c.bf16 %v10387_v58, %v10389_v61  ;;  %v10935_v61 = vpop.trf.xlu0 }
 0x1e0   : > { %10400 = vtanh.f32 %v1129_v62  ;;  %v9160_v0 = vpop.f32.mrb[20].mxu1  ;;  %9179 = vmatmul.mubr.msk.f32.gmra.mrb[12].mxu0 %vm963_vm2, %v10387_v58  ;;  %v10939_v62 = vpop.trf.xlu1 }
 0x1e1   : > { %v10391_v1 = vpop.eup %10390  ;;  %v1144_v2 = vadd.f32 %v9160_v0, %v10841_v30  ;;  %v1138_v3 = vpop.f32.mrb[21].mxu1  ;;  %9208 = vmatmul.mubr.msk.f32.vlgmr.msra.gmra.mrb[26].mxu1 %vm1393_vm3, %v10787_v17  ;;  %9936 = vmatprep.subr.bf16.mxu1 %v9935_v63  ;;  %v10946_v0 = vld [vmem:[%s11534_s7] ss:$0 sm:$0xff] }
 0x1e2   : > { %v10393_v4 = vpop.eup %10392  ;;  %v1139_v5 = vadd.f32 %v10841_v30, %v1138_v3  ;;  %9938 = vmatpush3.bf16.msra.mxu1 %v9935_v63  ;;  %9214 = vmatprep.mubr.msk.f32.mxu1 %vm1393_vm3, %v10790_v18 }
 0x1e3   : > { %10402 = vtanh.f32 %v1144_v2  ;;  %9181 = vmatprep.mubr.msk.f32.mxu0 %vm963_vm2, %v10393_v4  ;;  %v9939_v6 = vpack.c.bf16 %v10391_v1, %v10393_v4  ;;  %v10941_v63 = vpop.trf.xlu0 }
 0x1e4   : > { %10404 = vtanh.f32 %v1139_v5  ;;  %v9163_v7 = vpop.f32.mrb[22].mxu1  ;;  %9182 = vmatmul.mubr.msk.f32.gmra.mrb[14].mxu0 %vm963_vm2, %v10391_v1  ;;  %v10948_v1 = vpop.trf.xlu1 }
 0x1e5   : > { %v10395_v8 = vpop.eup %10394  ;;  %v1154_v9 = vadd.f32 %v9163_v7, %v10841_v30  ;;  %v1148_v10 = vpop.f32.mrb[23].mxu1  ;;  %9215 = vmatmul.mubr.msk.f32.vlgmr.msra.gmra.mrb[28].mxu1 %vm1393_vm3, %v10795_v19  ;;  %9940 = vmatprep.subr.bf16.mxu1 %v9939_v6 }
 0x1e6   : > { %v10397_v11 = vpop.eup %10396  ;;  %v1149_v12 = vadd.f32 %v10841_v30, %v1148_v10  ;;  %9942 = vmatpush3.bf16.msra.mxu1 %v9939_v6  ;;  %9221 = vmatprep.mubr.msk.f32.mxu1 %vm1393_vm3, %v10798_v20 }
 0x1e7   : > { %10406 = vtanh.f32 %v1154_v9  ;;  %9184 = vmatprep.mubr.msk.f32.mxu0 %vm963_vm2, %v10397_v11  ;;  %v9943_v13 = vpack.c.bf16 %v10395_v8, %v10397_v11  ;;  %v10951_v4 = vpop.trf.xlu0 }
 0x1e8   : > { %10408 = vtanh.f32 %v1149_v12  ;;  %9185 = vmatmul.mubr.msk.f32.gmra.mrb[16].mxu0 %vm963_vm2, %v10395_v8  ;;  %v10955_v10 = vpop.trf.xlu1 }
 0x1e9   : > { %v10399_v31 = vpop.eup %10398  ;;  %9222 = vmatmul.mubr.msk.f32.vlgmr.msra.gmra.mrb[30].mxu1 %vm1393_vm3, %v10803_v21  ;;  %9944 = vmatprep.subr.bf16.mxu1 %v9943_v13 }
 0x1ea   : > { %v10401_v32 = vpop.eup %10400  ;;  %9946 = vmatpush3.bf16.msra.mxu1 %v9943_v13  ;;  %9228 = vmatprep.mubr.msk.f32.mxu1 %vm1393_vm3, %v10806_v22 }
 0x1eb   : > { %9187 = vmatprep.mubr.msk.f32.mxu0 %vm963_vm2, %v10401_v32  ;;  %v9947_v30 = vpack.c.bf16 %v10399_v31, %v10401_v32  ;;  %v10958_v12 = vpop.trf.xlu0 }
 0x1ec   : > { %9188 = vmatmul.mubr.msk.f32.gmra.mrb[18].mxu0 %vm963_vm2, %v10399_v31  ;;  %v10966_v34 = vpop.trf.xlu1 }
 0x1ed   : > { %v10403_v35 = vpop.eup %10402  ;;  %9229 = vmatmul.mubr.msk.f32.vlgmr.msra.gmra.mrb[32].mxu1 %vm1393_vm3, %v10811_v23  ;;  %9948 = vmatprep.subr.bf16.mxu1 %v9947_v30 }
 0x1ee   : > { %v10405_v36 = vpop.eup %10404  ;;  %9950 = vmatpush3.bf16.msra.mxu1 %v9947_v30  ;;  %9235 = vmatprep.mubr.msk.f32.mxu1 %vm1393_vm3, %v10814_v24 }
 0x1ef   : > { %9190 = vmatprep.mubr.msk.f32.mxu0 %vm963_vm2, %v10405_v36  ;;  %v9951_v37 = vpack.c.bf16 %v10403_v35, %v10405_v36 }
 0x1f0   : > { %9191 = vmatmul.mubr.msk.f32.gmra.mrb[20].mxu0 %vm963_vm2, %v10403_v35 }
 0x1f1   : > { %v10407_v39 = vpop.eup %10406  ;;  %9236 = vmatmul.mubr.msk.f32.vlgmr.msra.gmra.mrb[34].mxu1 %vm1393_vm3, %v10819_v25  ;;  %9952 = vmatprep.subr.bf16.mxu1 %v9951_v37 }
 0x1f2   : > { %v10409_v42 = vpop.eup %10408  ;;  %9954 = vmatpush3.bf16.msra.mxu1 %v9951_v37  ;;  %9242 = vmatprep.mubr.msk.f32.mxu1 %vm1393_vm3, %v10822_v26 }
 0x1f3   : > { %9193 = vmatprep.mubr.msk.f32.mxu0 %vm963_vm2, %v10409_v42  ;;  %v9955_v43 = vpack.c.bf16 %v10407_v39, %v10409_v42  ;;  %9960 = vmatprep.subr.bf16.mxu1 %v9959_v38 }
 0x1f4   : > { %9194 = vmatmul.mubr.msk.f32.gmra.mrb[22].mxu0 %vm963_vm2, %v10407_v39  ;;  %v10969_v39 = vpop.trf.xlu0 }
 0x1f5   : > { %9243 = vmatmul.mubr.msk.f32.vlgmr.msra.gmra.mrb[36].mxu1 %vm1393_vm3, %v10827_v27  ;;  %9956 = vmatprep.subr.bf16.mxu0 %v9955_v43 }
 0x1f6   : > { %9958 = vmatpush3.bf16.msra.mxu0 %v9955_v43  ;;  %9249 = vmatprep.mubr.msk.f32.mxu0 %vm1393_vm3, %v10830_v28 }
 0x1f7   : > { %9962 = vmatpush3.bf16.msra.mxu1 %v9959_v38 }
 0x1f8   : > { %9964 = vmatprep.subr.bf16.mxu1 %v9963_v44 }
 0x1f9   : > { %9250 = vmatmul.mubr.msk.f32.vlgmr.msra.gmra.mrb[24].mxu0 %vm1393_vm3, %v10835_v29 }
 0x1fa   : > { %9288 = vmatprep.mubr.msk.f32.mxu0 %vm1393_vm3, %v10935_v61 }
 0x1fb   : > { %9966 = vmatpush3.bf16.msra.mxu1 %v9963_v44 }
 0x2b0   : > { %v9202_v45 = vpop.f32.mrb[24].mxu1 }
 0x2b1   : > { %v1466_v46 = vpop.f32.mrb[25].mxu1 }
 0x2b2   : > { %9260 = vmatprep.mubr.msk.f32.mxu1 %vm963_vm2, %v1466_v46 }
 0x2b3   : > { %9261 = vmatmul.mubr.msk.f32.vlgmr.msra.gmra.mrb[38].mxu1 %vm963_vm2, %v9202_v45  ;;  %v10977_v45 = vpop.trf.xlu1 }
 0x2b4   : > { %v9209_v47 = vpop.f32.mrb[26].mxu1 }
 0x2b5   : > { %v1547_v48 = vpop.f32.mrb[27].mxu1 }
 0x2b6   : > { %9263 = vmatprep.mubr.msk.f32.mxu1 %vm963_vm2, %v1547_v48 }
 0x2b7   : > { %9264 = vmatmul.mubr.msk.f32.gmra.mrb[40].mxu1 %vm963_vm2, %v9209_v47  ;;  %v10984_v47 = vpop.trf.xlu0 }
 0x2b8   : > { %v9216_v49 = vpop.f32.mrb[28].mxu1 }
 0x2b9   : > { %v1628_v50 = vpop.f32.mrb[29].mxu1 }
 0x2ba   : > { %9266 = vmatprep.mubr.msk.f32.mxu1 %vm963_vm2, %v1628_v50 }
 0x2bb   : > { %9267 = vmatmul.mubr.msk.f32.gmra.mrb[42].mxu1 %vm963_vm2, %v9216_v49 }
 0x2bc   : > { %v9223_v51 = vpop.f32.mrb[30].mxu1 }
 0x2bd   : > { %v1709_v52 = vpop.f32.mrb[31].mxu1 }
 0x2be   : > { %9269 = vmatprep.mubr.msk.f32.mxu1 %vm963_vm2, %v1709_v52 }
 0x2bf   : > { %9270 = vmatmul.mubr.msk.f32.gmra.mrb[44].mxu1 %vm963_vm2, %v9223_v51 }
 0x2c0   : > { %v9230_v53 = vpop.f32.mrb[32].mxu1 }
 0x2c1   : > { %v1790_v54 = vpop.f32.mrb[33].mxu1 }
 0x2c2   : > { %9272 = vmatprep.mubr.msk.f32.mxu1 %vm963_vm2, %v1790_v54 }
 0x2c3   : > { %9273 = vmatmul.mubr.msk.f32.gmra.mrb[46].mxu1 %vm963_vm2, %v9230_v53  ;;  %v10992_v53 = vpop.trf.xlu1 }
 0x2c4   : > { %v9237_v55 = vpop.f32.mrb[34].mxu1 }
 0x2c5   : > { %v1871_v56 = vpop.f32.mrb[35].mxu1 }
 0x2c6   : > { %9275 = vmatprep.mubr.msk.f32.mxu1 %vm963_vm2, %v1871_v56 }
 0x2c7   : > { %9276 = vmatmul.mubr.msk.f32.gmra.mrb[48].mxu1 %vm963_vm2, %v9237_v55 }
 0x2c8   : > { %v9244_v57 = vpop.f32.mrb[36].mxu1 }
 0x2c9   : > { %v1952_v58 = vpop.f32.mrb[37].mxu1 }
 0x2ca   : > { %9278 = vmatprep.mubr.msk.f32.mxu1 %vm963_vm2, %v1952_v58  ;;  %v10995_v58 = vpop.trf.xlu0 }
 0x2cb   : > { %9279 = vmatmul.mubr.msk.f32.gmra.mrb[50].mxu1 %vm963_vm2, %v9244_v57 }
 0x2cc   : > { %v9251_v59 = vpop.f32.mrb[24].mxu0 }
 0x2cd   : > { %v2033_v60 = vpop.f32.mrb[25].mxu0 }
 0x2ce   : > { %9281 = vmatprep.mubr.msk.f32.mxu1 %vm963_vm2, %v2033_v60 }
 0x2cf   : > { %9282 = vmatmul.mubr.msk.f32.gmra.mrb[52].mxu1 %vm963_vm2, %v9251_v59 }
 0x2d0   : > { %9376 = vmatprep.mubr.msk.f32.mxu1 %vm1393_vm3, %v10773_v14 }
 0x386   : > { %v9262_v2 = vpop.f32.mrb[38].mxu1 }
 0x387   : > { %v2173_v3 = vadd.f32 %v9262_v2, %v10946_v0  ;;  %v2167_v14 = vpop.f32.mrb[39].mxu1 }
 0x388   : > { %v2168_v5 = vadd.f32 %v10946_v0, %v2167_v14 }
 0x38a   : > { %v9967_v6 = vpack.c.bf16 %v2173_v3, %v2168_v5  ;;  %v9265_v7 = vpop.f32.mrb[40].mxu1  ;;  %v11003_v5 = vpop.trf.xlu1 }
 0x38b   : > { %v2183_v8 = vadd.f32 %v9265_v7, %v10946_v0  ;;  %v2177_v9 = vpop.f32.mrb[41].mxu1  ;;  %v11008_v7 = vpop.trf.xlu0 }
 0x38c   : > { %v2178_v11 = vadd.f32 %v10946_v0, %v2177_v9  ;;  %9968 = vmatprep.subr.bf16.mxu0 %v9967_v6 }
 0x38d   : > { %9970 = vmatpush3.bf16.msra.mxu0 %v9967_v6 }
 0x38e   : > { %v9971_v13 = vpack.c.bf16 %v2183_v8, %v2178_v11  ;;  %v9268_v31 = vpop.f32.mrb[42].mxu1  ;;  %v11014_v9 = vpop.trf.xlu1  ;;  %v1178_v11 = vld [vmem:[%s11535_s8 + $0x28] sm:$0xff] }
 0x38f   : > { %v2193_v32 = vadd.f32 %v9268_v31, %v10946_v0  ;;  %v2187_v30 = vpop.f32.mrb[43].mxu1  ;;  %v1179_v31 = vld [vmem:[%s11535_s8 + $0x30] sm:$0xff] }
 0x390   : > { %v2188_v33 = vadd.f32 %v10946_v0, %v2187_v30  ;;  %9289 = vmatmul.mubr.msk.f32.vlgmr.msra.gmra.mrb[26].mxu0 %vm1393_vm3, %v10941_v63  ;;  %9972 = vmatprep.subr.bf16.mxu0 %v9971_v13 }
 0x391   : > { %9974 = vmatpush3.bf16.msra.mxu0 %v9971_v13  ;;  %9295 = vmatprep.mubr.msk.f32.mxu0 %vm1393_vm3, %v10939_v62 }
 0x392   : > { %v9975_v35 = vpack.c.bf16 %v2193_v32, %v2188_v33  ;;  %v9271_v36 = vpop.f32.mrb[44].mxu1  ;;  %v1180_v32 = vld [vmem:[%s11535_s8 + $0x38] sm:$0xff]  ;;  %v8428_v33 = vld [vmem:[%s11533_s6 + $0x20] sm:$0xff] }
 0x393   : > { %v2203_v37 = vadd.f32 %v9271_v36, %v10946_v0  ;;  %v2197_v38 = vpop.f32.mrb[45].mxu1  ;;  %v10003_v30 = vpack.c.bf16 %v1180_v32, %v1179_v31 }
 0x394   : > { %v2198_v40 = vadd.f32 %v10946_v0, %v2197_v38  ;;  %9296 = vmatmul.mubr.msk.f32.vlgmr.msra.gmra.mrb[28].mxu0 %vm1393_vm3, %v10948_v1  ;;  %9976 = vmatprep.subr.bf16.mxu0 %v9975_v35 }
 0x395   : > { %9978 = vmatpush3.bf16.msra.mxu0 %v9975_v35  ;;  %9302 = vmatprep.mubr.msk.f32.mxu0 %vm1393_vm3, %v10951_v4  ;;  %v8429_v35 = vld [vmem:[%s11533_s6 + $0x28] sm:$0xff] }
 0x396   : > { %v9979_v41 = vpack.c.bf16 %v2203_v37, %v2198_v40  ;;  %v9274_v42 = vpop.f32.mrb[46].mxu1  ;;  %v10039_v36 = vpack.c.bf16 %v8429_v35, %v8428_v33 }
 0x397   : > { %v2213_v43 = vadd.f32 %v9274_v42, %v10946_v0  ;;  %v2207_v44 = vpop.f32.mrb[47].mxu1 }
 0x398   : > { %v2208_v46 = vadd.f32 %v10946_v0, %v2207_v44  ;;  %9303 = vmatmul.mubr.msk.f32.vlgmr.msra.gmra.mrb[30].mxu0 %vm1393_vm3, %v10958_v12  ;;  %9980 = vmatprep.subr.bf16.mxu0 %v9979_v41  ;;  %v8430_v44 = vld [vmem:[%s11533_s6 + $0x30] sm:$0xff] }
 0x399   : > { %9982 = vmatpush3.bf16.msra.mxu0 %v9979_v41  ;;  %9309 = vmatprep.mubr.msk.f32.mxu0 %vm1393_vm3, %v10955_v10 }
 0x39a   : > { %v9983_v48 = vpack.c.bf16 %v2213_v43, %v2208_v46  ;;  %v9277_v49 = vpop.f32.mrb[48].mxu1  ;;  %v8431_v46 = vld [vmem:[%s11533_s6 + $0x38] sm:$0xff] }
 0x39b   : > { %v2223_v50 = vadd.f32 %v9277_v49, %v10946_v0  ;;  %v2217_v51 = vpop.f32.mrb[49].mxu1 }
 0x39c   : > { %v2218_v52 = vadd.f32 %v10946_v0, %v2217_v51  ;;  %9310 = vmatmul.mubr.msk.f32.vlgmr.msra.gmra.mrb[32].mxu0 %vm1393_vm3, %v10966_v34  ;;  %9984 = vmatprep.subr.bf16.mxu0 %v9983_v48  ;;  %v10043_v51 = vpack.c.bf16 %v8431_v46, %v8430_v44 }
 0x39d   : > { %9986 = vmatpush3.bf16.msra.mxu0 %v9983_v48  ;;  %9316 = vmatprep.mubr.msk.f32.mxu0 %vm1393_vm3, %v10969_v39 }
 0x39e   : > { %v9987_v54 = vpack.c.bf16 %v2223_v50, %v2218_v52  ;;  %v9280_v55 = vpop.f32.mrb[50].mxu1 }
 0x39f   : > { %v2233_v56 = vadd.f32 %v9280_v55, %v10946_v0  ;;  %v2227_v57 = vpop.f32.mrb[51].mxu1 }
 0x3a0   : > { %v2228_v59 = vadd.f32 %v10946_v0, %v2227_v57  ;;  %9317 = vmatmul.mubr.msk.f32.vlgmr.msra.gmra.mrb[34].mxu0 %vm1393_vm3, %v10984_v47  ;;  %9988 = vmatprep.subr.bf16.mxu0 %v9987_v54 }
 0x3a1   : > { %9990 = vmatpush3.bf16.msra.mxu0 %v9987_v54  ;;  %9323 = vmatprep.mubr.msk.f32.mxu0 %vm1393_vm3, %v10977_v45 }
 0x3a2   : > { %v9991_v60 = vpack.c.bf16 %v2233_v56, %v2228_v59  ;;  %v9283_v2 = vpop.f32.mrb[52].mxu1 }
 0x3a3   : > { %v2243_v3 = vadd.f32 %v9283_v2, %v10946_v0  ;;  %v2237_v14 = vpop.f32.mrb[53].mxu1 }
 0x3a4   : > { %v2238_v6 = vadd.f32 %v10946_v0, %v2237_v14  ;;  %9324 = vmatmul.mubr.msk.f32.vlgmr.msra.gmra.mrb[36].mxu0 %vm1393_vm3, %v10992_v53  ;;  %9992 = vmatprep.subr.bf16.mxu0 %v9991_v60  ;;  %v1177_v0 = vld [vmem:[%s11535_s8 + $0x20] sm:$0xff] }
 0x3a5   : > { %9994 = vmatpush3.bf16.msra.mxu0 %v9991_v60  ;;  %9330 = vmatprep.mubr.msk.f32.mxu0 %vm1393_vm3, %v10995_v58  ;;  %v9999_v13 = vpack.c.bf16 %v1178_v11, %v1177_v0 }
 0x3a6   : > { %v9995_v8 = vpack.c.bf16 %v2243_v3, %v2238_v6 }
 0x3a8   : > { %9331 = vmatmul.mubr.msk.f32.vlgmr.msra.gmra.mrb[38].mxu0 %vm1393_vm3, %v11008_v7  ;;  %9996 = vmatprep.subr.bf16.mxu0 %v9995_v8 }
 0x3a9   : > { %9998 = vmatpush3.bf16.msra.mxu0 %v9995_v8  ;;  %9337 = vmatprep.mubr.msk.f32.mxu0 %vm1393_vm3, %v11003_v5 }
 0x3aa   : > { %10000 = vmatprep.subr.bf16.mxu0 %v9999_v13 }
 0x3ac   : > { %9338 = vmatmul.mubr.msk.f32.vlgmr.msra.gmra.mrb[40].mxu0 %vm1393_vm3, %v11014_v9 }
 0x3ad   : > { %10002 = vmatpush3.bf16.msra.mxu0 %v9999_v13 }
 0x3ae   : > { %10004 = vmatprep.subr.bf16.mxu0 %v10003_v30 }
 0x3b1   : > { %10006 = vmatpush3.bf16.msra.mxu0 %v10003_v30 }
 0x3b2   : > { %10040 = vmatprep.subr.bf16.mxu0 %v10039_v36 }
 0x463   : > { %v9290_v37 = vpop.f32.mrb[26].mxu0 }
 0x464   : > { %10410 = vtanh.f32 %v9290_v37  ;;  %v2318_v38 = vpop.f32.mrb[27].mxu0 }
 0x465   : > { %10412 = vtanh.f32 %v2318_v38 }
 0x467   : > { %v9297_v40 = vpop.f32.mrb[28].mxu0 }
 0x468   : > { %10414 = vtanh.f32 %v9297_v40  ;;  %v2399_v41 = vpop.f32.mrb[29].mxu0 }
 0x469   : > { %10416 = vtanh.f32 %v2399_v41 }
 0x46b   : > { %v9304_v42 = vpop.f32.mrb[30].mxu0 }
 0x46c   : > { %10418 = vtanh.f32 %v9304_v42  ;;  %v2480_v43 = vpop.f32.mrb[31].mxu0 }
 0x46d   : > { %10420 = vtanh.f32 %v2480_v43 }
 0x46e   : > { %v10411_v48 = vpop.eup %10410 }
 0x46f   : > { %v10413_v49 = vpop.eup %10412  ;;  %v9311_v50 = vpop.f32.mrb[32].mxu0 }
 0x470   : > { %10422 = vtanh.f32 %v9311_v50  ;;  %v2561_v52 = vpop.f32.mrb[33].mxu0  ;;  %9348 = vmatprep.mubr.msk.f32.mxu0 %vm963_vm2, %v10413_v49  ;;  %v10007_v54 = vpack.c.bf16 %v10411_v48, %v10413_v49 }
 0x471   : > { %10424 = vtanh.f32 %v2561_v52  ;;  %9349 = vmatmul.mubr.msk.f32.vlgmr.msra.gmra.mrb[8].mxu0 %vm963_vm2, %v10411_v48 }
 0x472   : > { %v10415_v55 = vpop.eup %10414  ;;  %10008 = vmatprep.subr.bf16.mxu1 %v10007_v54  ;;  %10042 = vmatpush3.bf16.msra.mxu0 %v10039_v36 }
 0x473   : > { %v10417_v56 = vpop.eup %10416  ;;  %v9318_v57 = vpop.f32.mrb[34].mxu0  ;;  %10010 = vmatpush3.bf16.msra.mxu1 %v10007_v54  ;;  %10044 = vmatprep.subr.bf16.mxu0 %v10043_v51 }
 0x474   : > { %10426 = vtanh.f32 %v9318_v57  ;;  %v2642_v59 = vpop.f32.mrb[35].mxu0  ;;  %v10011_v60 = vpack.c.bf16 %v10415_v55, %v10417_v56  ;;  %9351 = vmatprep.mubr.msk.f32.mxu0 %vm963_vm2, %v10417_v56 }
 0x475   : > { %10428 = vtanh.f32 %v2642_v59  ;;  %9352 = vmatmul.mubr.msk.f32.gmra.mrb[10].mxu0 %vm963_vm2, %v10415_v55 }
 0x476   : > { %v10419_v2 = vpop.eup %10418  ;;  %9377 = vmatmul.mubr.msk.f32.vlgmr.msra.gmra.mrb[54].mxu1 %vm1393_vm3, %v10779_v15  ;;  %10012 = vmatprep.subr.bf16.mxu1 %v10011_v60 }
 0x477   : > { %v10421_v3 = vpop.eup %10420  ;;  %v9325_v14 = vpop.f32.mrb[36].mxu0  ;;  %10014 = vmatpush3.bf16.msra.mxu1 %v10011_v60  ;;  %9383 = vmatprep.mubr.msk.f32.mxu1 %vm1393_vm3, %v10782_v16 }
 0x478   : > { %10430 = vtanh.f32 %v9325_v14  ;;  %v2723_v6 = vpop.f32.mrb[37].mxu0  ;;  %v10015_v8 = vpack.c.bf16 %v10419_v2, %v10421_v3  ;;  %9354 = vmatprep.mubr.msk.f32.mxu0 %vm963_vm2, %v10421_v3  ;;  %10046 = vmatpush3.bf16.msra.mxu0 %v10043_v51  ;;  %v8433_v51 = vld [vmem:[%s11534_s7 + $0x1] ss:$0 sm:$0xff] }
 0x479   : > { %10432 = vtanh.f32 %v2723_v6  ;;  %9355 = vmatmul.mubr.msk.f32.gmra.mrb[12].mxu0 %vm963_vm2, %v10419_v2 }
 0x47a   : > { %v10423_v0 = vpop.eup %10422  ;;  %9384 = vmatmul.mubr.msk.f32.vlgmr.msra.gmra.mrb[56].mxu1 %vm1393_vm3, %v10787_v17  ;;  %10016 = vmatprep.subr.bf16.mxu1 %v10015_v8 }
 0x47b   : > { %v10425_v15 = vpop.eup %10424  ;;  %v9332_v11 = vpop.f32.mrb[38].mxu0  ;;  %10018 = vmatpush3.bf16.msra.mxu1 %v10015_v8  ;;  %9390 = vmatprep.mubr.msk.f32.mxu1 %vm1393_vm3, %v10790_v18 }
 0x47c   : > { %10434 = vtanh.f32 %v9332_v11  ;;  %v2804_v16 = vpop.f32.mrb[39].mxu0  ;;  %v10019_v13 = vpack.c.bf16 %v10423_v0, %v10425_v15  ;;  %9357 = vmatprep.mubr.msk.f32.mxu0 %vm963_vm2, %v10425_v15 }
 0x47d   : > { %10436 = vtanh.f32 %v2804_v16  ;;  %9358 = vmatmul.mubr.msk.f32.gmra.mrb[14].mxu0 %vm963_vm2, %v10423_v0 }
 0x47e   : > { %v10427_v31 = vpop.eup %10426  ;;  %9391 = vmatmul.mubr.msk.f32.vlgmr.msra.gmra.mrb[58].mxu1 %vm1393_vm3, %v10795_v19  ;;  %10020 = vmatprep.subr.bf16.mxu1 %v10019_v13 }
 0x47f   : > { %v10429_v17 = vpop.eup %10428  ;;  %v9339_v32 = vpop.f32.mrb[40].mxu0  ;;  %10022 = vmatpush3.bf16.msra.mxu1 %v10019_v13  ;;  %9397 = vmatprep.mubr.msk.f32.mxu1 %vm1393_vm3, %v10798_v20 }
 0x480   : > { %10438 = vtanh.f32 %v9339_v32  ;;  %v2885_v18 = vpop.f32.mrb[41].mxu0  ;;  %v10023_v30 = vpack.c.bf16 %v10427_v31, %v10429_v17  ;;  %9360 = vmatprep.mubr.msk.f32.mxu0 %vm963_vm2, %v10429_v17 }
 0x481   : > { %10440 = vtanh.f32 %v2885_v18  ;;  %9361 = vmatmul.mubr.msk.f32.gmra.mrb[16].mxu0 %vm963_vm2, %v10427_v31 }
 0x482   : > { %v10431_v33 = vpop.eup %10430  ;;  %9398 = vmatmul.mubr.msk.f32.vlgmr.msra.gmra.mrb[60].mxu1 %vm1393_vm3, %v10803_v21  ;;  %10024 = vmatprep.subr.bf16.mxu1 %v10023_v30 }
 0x483   : > { %v10433_v19 = vpop.eup %10432  ;;  %10026 = vmatpush3.bf16.msra.mxu1 %v10023_v30  ;;  %9404 = vmatprep.mubr.msk.f32.mxu1 %vm1393_vm3, %v10806_v22 }
 0x484   : > { %v10027_v35 = vpack.c.bf16 %v10431_v33, %v10433_v19  ;;  %9363 = vmatprep.mubr.msk.f32.mxu0 %vm963_vm2, %v10433_v19 }
 0x485   : > { %9364 = vmatmul.mubr.msk.f32.gmra.mrb[18].mxu0 %vm963_vm2, %v10431_v33 }
 0x486   : > { %v10435_v20 = vpop.eup %10434  ;;  %9405 = vmatmul.mubr.msk.f32.vlgmr.msra.gmra.mrb[62].mxu1 %vm1393_vm3, %v10811_v23  ;;  %10028 = vmatprep.subr.bf16.mxu1 %v10027_v35 }
 0x487   : > { %v10437_v36 = vpop.eup %10436  ;;  %10030 = vmatpush3.bf16.msra.mxu1 %v10027_v35  ;;  %9411 = vmatprep.mubr.msk.f32.mxu1 %vm1393_vm3, %v10814_v24 }
 0x488   : > { %v10031_v21 = vpack.c.bf16 %v10435_v20, %v10437_v36  ;;  %9366 = vmatprep.mubr.msk.f32.mxu0 %vm963_vm2, %v10437_v36 }
 0x489   : > { %9367 = vmatmul.mubr.msk.f32.gmra.mrb[20].mxu0 %vm963_vm2, %v10435_v20 }
 0x48a   : > { %v10439_v22 = vpop.eup %10438  ;;  %9412 = vmatmul.mubr.msk.f32.vlgmr.msra.gmra.mrb[64].mxu1 %vm1393_vm3, %v10819_v25  ;;  %10032 = vmatprep.subr.bf16.mxu1 %v10031_v21 }
 0x48b   : > { %v10441_v37 = vpop.eup %10440  ;;  %10034 = vmatpush3.bf16.msra.mxu1 %v10031_v21  ;;  %9418 = vmatprep.mubr.msk.f32.mxu1 %vm1393_vm3, %v10822_v26 }
 0x48c   : > { %v10035_v23 = vpack.c.bf16 %v10439_v22, %v10441_v37  ;;  %9369 = vmatprep.mubr.msk.f32.mxu0 %vm963_vm2, %v10441_v37 }
 0x48d   : > { %9370 = vmatmul.mubr.msk.f32.gmra.mrb[22].mxu0 %vm963_vm2, %v10439_v22 }
 0x48e   : > { %9419 = vmatmul.mubr.msk.f32.vlgmr.msra.gmra.mrb[66].mxu1 %vm1393_vm3, %v10827_v27  ;;  %10036 = vmatprep.subr.bf16.mxu1 %v10035_v23 }
 0x48f   : > { %10038 = vmatpush3.bf16.msra.mxu1 %v10035_v23  ;;  %9425 = vmatprep.mubr.msk.f32.mxu1 %vm1393_vm3, %v10830_v28 }
 0x492   : > { %9426 = vmatmul.mubr.msk.f32.vlgmr.msra.gmra.mrb[68].mxu1 %vm1393_vm3, %v10835_v29 }
 0x493   : > { %9464 = vmatprep.mubr.msk.f32.mxu1 %vm1393_vm3, %v10935_v61 }
 0x549   : > { %v9378_v24 = vpop.f32.mrb[54].mxu1 }
 0x54a   : > { %v3185_v25 = vpop.f32.mrb[55].mxu1 }
 0x54b   : > { %9436 = vmatprep.mubr.msk.f32.mxu0 %vm963_vm2, %v3185_v25 }
 0x54c   : > { %9437 = vmatmul.mubr.msk.f32.vlgmr.msra.gmra.mrb[42].mxu0 %vm963_vm2, %v9378_v24 }
 0x54d   : > { %v9385_v26 = vpop.f32.mrb[56].mxu1 }
 0x54e   : > { %v3260_v38 = vpop.f32.mrb[57].mxu1 }
 0x54f   : > { %9439 = vmatprep.mubr.msk.f32.mxu0 %vm963_vm2, %v3260_v38 }
 0x550   : > { %9440 = vmatmul.mubr.msk.f32.gmra.mrb[44].mxu0 %vm963_vm2, %v9385_v26 }
 0x551   : > { %v9392_v27 = vpop.f32.mrb[58].mxu1 }
 0x552   : > { %v3335_v28 = vpop.f32.mrb[59].mxu1 }
 0x553   : > { %9442 = vmatprep.mubr.msk.f32.mxu0 %vm963_vm2, %v3335_v28 }
 0x554   : > { %9443 = vmatmul.mubr.msk.f32.gmra.mrb[46].mxu0 %vm963_vm2, %v9392_v27 }
 0x555   : > { %v9399_v29 = vpop.f32.mrb[60].mxu1 }
 0x556   : > { %v3410_v40 = vpop.f32.mrb[61].mxu1 }
 0x557   : > { %9445 = vmatprep.mubr.msk.f32.mxu0 %vm963_vm2, %v3410_v40 }
 0x558   : > { %9446 = vmatmul.mubr.msk.f32.gmra.mrb[48].mxu0 %vm963_vm2, %v9399_v29 }
 0x559   : > { %v9406_v41 = vpop.f32.mrb[62].mxu1 }
 0x55a   : > { %v3485_v42 = vpop.f32.mrb[63].mxu1 }
 0x55b   : > { %9448 = vmatprep.mubr.msk.f32.mxu0 %vm963_vm2, %v3485_v42  ;;  %v11142_v42 = vld [vmem:[%s10770_s18] sm:$0xff] }
 0x55c   : > { %9449 = vmatmul.mubr.msk.f32.gmra.mrb[50].mxu0 %vm963_vm2, %v9406_v41 }
 0x55d   : > { %v9413_v43 = vpop.f32.mrb[64].mxu1 }
 0x55e   : > { %v3560_v44 = vpop.f32.mrb[65].mxu1 }
 0x55f   : > { %9451 = vmatprep.mubr.msk.f32.mxu0 %vm963_vm2, %v3560_v44  ;;  %v1182_v44 = vld [vmem:[%s11535_s8 + $0x48] sm:$0xff] }
 0x560   : > { %9452 = vmatmul.mubr.msk.f32.gmra.mrb[52].mxu0 %vm963_vm2, %v9413_v43  ;;  %v1181_v43 = vld [vmem:[%s11535_s8 + $0x40] sm:$0xff] }
 0x561   : > { %v9420_v46 = vpop.f32.mrb[66].mxu1 }
 0x562   : > { %v3635_v48 = vpop.f32.mrb[67].mxu1 }
 0x563   : > { %9454 = vmatprep.mubr.msk.f32.mxu0 %vm963_vm2, %v3635_v48  ;;  %v1183_v48 = vld [vmem:[%s11535_s8 + $0x50] sm:$0xff] }
 0x564   : > { %9455 = vmatmul.mubr.msk.f32.gmra.mrb[54].mxu0 %vm963_vm2, %v9420_v46  ;;  %v10079_v46 = vpack.c.bf16 %v1182_v44, %v1181_v43 }
 0x565   : > { %v9427_v49 = vpop.f32.mrb[68].mxu1 }
 0x566   : > { %v3710_v50 = vpop.f32.mrb[69].mxu1  ;;  %10080 = vmatprep.subr.bf16.mxu0 %v10079_v46 }
 0x567   : > { %9457 = vmatprep.mubr.msk.f32.mxu0 %vm963_vm2, %v3710_v50  ;;  %10082 = vmatpush3.bf16.msra.mxu0 %v10079_v46 }
 0x568   : > { %9458 = vmatmul.mubr.msk.f32.gmra.mrb[56].mxu0 %vm963_vm2, %v9427_v49  ;;  %v1184_v49 = vld [vmem:[%s11535_s8 + $0x58] sm:$0xff] }
 0x569   : > { %v10083_v50 = vpack.c.bf16 %v1184_v49, %v1183_v48  ;;  %v11211_v48 = vld [vmem:[%s10770_s18 + $0x38] sm:$0xff] }
 0x56b   : > { %10084 = vmatprep.subr.bf16.mxu0 %v10083_v50 }
 0x56c   : > { %10086 = vmatpush3.bf16.msra.mxu0 %v10083_v50  ;;  %v11216_v50 = vld [vmem:[%s10770_s18 + $0x40] sm:$0xff] }
 0x61f   : > { %v9438_v52 = vpop.f32.mrb[42].mxu0 }
 0x620   : > { %v3852_v54 = vadd.f32 %v9438_v52, %v8433_v51  ;;  %v3846_v55 = vpop.f32.mrb[43].mxu0  ;;  %v8499_v52 = vld [vmem:[%s11533_s6 + $0x48] sm:$0xff] }
 0x621   : > { %v3847_v56 = vadd.f32 %v8433_v51, %v3846_v55 }
 0x623   : > { %v10047_v57 = vpack.c.bf16 %v3852_v54, %v3847_v56  ;;  %v9441_v59 = vpop.f32.mrb[44].mxu0 }
 0x624   : > { %v3862_v60 = vadd.f32 %v9441_v59, %v8433_v51  ;;  %v3856_v2 = vpop.f32.mrb[45].mxu0 }
 0x625   : > { %v3857_v3 = vadd.f32 %v8433_v51, %v3856_v2  ;;  %10048 = vmatprep.subr.bf16.mxu1 %v10047_v57 }
 0x626   : > { %10050 = vmatpush3.bf16.msra.mxu1 %v10047_v57 }
 0x627   : > { %v10051_v14 = vpack.c.bf16 %v3862_v60, %v3857_v3  ;;  %v9444_v6 = vpop.f32.mrb[46].mxu0  ;;  %v8500_v3 = vld [vmem:[%s11533_s6 + $0x50] sm:$0xff] }
 0x628   : > { %v3872_v8 = vadd.f32 %v9444_v6, %v8433_v51  ;;  %v3866_v0 = vpop.f32.mrb[47].mxu0 }
 0x629   : > { %v3867_v15 = vadd.f32 %v8433_v51, %v3866_v0  ;;  %9465 = vmatmul.mubr.msk.f32.vlgmr.msra.gmra.mrb[70].mxu1 %vm1393_vm3, %v10941_v63  ;;  %10052 = vmatprep.subr.bf16.mxu1 %v10051_v14 }
 0x62a   : > { %10054 = vmatpush3.bf16.msra.mxu1 %v10051_v14  ;;  %9471 = vmatprep.mubr.msk.f32.mxu1 %vm1393_vm3, %v10939_v62  ;;  %v8501_v14 = vld [vmem:[%s11533_s6 + $0x58] sm:$0xff] }
 0x62b   : > { %v10055_v11 = vpack.c.bf16 %v3872_v8, %v3867_v15  ;;  %v9447_v16 = vpop.f32.mrb[48].mxu0  ;;  %v10123_v15 = vpack.c.bf16 %v8501_v14, %v8500_v3  ;;  %v11240_v3 = vld [vmem:[%s10770_s18 + $0x60] sm:$0xff] }
 0x62c   : > { %v3882_v13 = vadd.f32 %v9447_v16, %v8433_v51  ;;  %v3876_v31 = vpop.f32.mrb[49].mxu0 }
 0x62d   : > { %v3877_v17 = vadd.f32 %v8433_v51, %v3876_v31  ;;  %9472 = vmatmul.mubr.msk.f32.vlgmr.msra.gmra.mrb[72].mxu1 %vm1393_vm3, %v10948_v1  ;;  %10056 = vmatprep.subr.bf16.mxu1 %v10055_v11 }
 0x62e   : > { %10058 = vmatpush3.bf16.msra.mxu1 %v10055_v11  ;;  %9478 = vmatprep.mubr.msk.f32.mxu1 %vm1393_vm3, %v10951_v4 }
 0x62f   : > { %v10059_v32 = vpack.c.bf16 %v3882_v13, %v3877_v17  ;;  %v9450_v18 = vpop.f32.mrb[50].mxu0 }
 0x630   : > { %v3892_v30 = vadd.f32 %v9450_v18, %v8433_v51  ;;  %v3886_v33 = vpop.f32.mrb[51].mxu0 }
 0x631   : > { %v3887_v19 = vadd.f32 %v8433_v51, %v3886_v33  ;;  %9479 = vmatmul.mubr.msk.f32.vlgmr.msra.gmra.mrb[74].mxu1 %vm1393_vm3, %v10958_v12  ;;  %10060 = vmatprep.subr.bf16.mxu1 %v10059_v32  ;;  %v11175_v33 = vld [vmem:[%s10770_s18 + $0x8] sm:$0xff] }
 0x632   : > { %10062 = vmatpush3.bf16.msra.mxu1 %v10059_v32  ;;  %9485 = vmatprep.mubr.msk.f32.mxu1 %vm1393_vm3, %v10955_v10 }
 0x633   : > { %v10063_v35 = vpack.c.bf16 %v3892_v30, %v3887_v19  ;;  %v9453_v20 = vpop.f32.mrb[52].mxu0 }
 0x634   : > { %v3902_v36 = vadd.f32 %v9453_v20, %v8433_v51  ;;  %v3896_v21 = vpop.f32.mrb[53].mxu0  ;;  %v11180_v20 = vld [vmem:[%s10770_s18 + $0x10] sm:$0xff] }
 0x635   : > { %v3897_v22 = vadd.f32 %v8433_v51, %v3896_v21  ;;  %9486 = vmatmul.mubr.msk.f32.vlgmr.msra.gmra.mrb[76].mxu1 %vm1393_vm3, %v10966_v34  ;;  %10064 = vmatprep.subr.bf16.mxu1 %v10063_v35 }
 0x636   : > { %10066 = vmatpush3.bf16.msra.mxu1 %v10063_v35  ;;  %9492 = vmatprep.mubr.msk.f32.mxu1 %vm1393_vm3, %v10969_v39 }
 0x637   : > { %v10067_v37 = vpack.c.bf16 %v3902_v36, %v3897_v22  ;;  %v9456_v23 = vpop.f32.mrb[54].mxu0 }
 0x638   : > { %v3912_v24 = vadd.f32 %v9456_v23, %v8433_v51  ;;  %v3906_v25 = vpop.f32.mrb[55].mxu0 }
 0x639   : > { %v3907_v26 = vadd.f32 %v8433_v51, %v3906_v25  ;;  %9493 = vmatmul.mubr.msk.f32.vlgmr.msra.gmra.mrb[78].mxu1 %vm1393_vm3, %v10984_v47  ;;  %10068 = vmatprep.subr.bf16.mxu1 %v10067_v37  ;;  %v11192_v25 = vld [vmem:[%s10770_s18 + $0x20] sm:$0xff] }
 0x63a   : > { %10070 = vmatpush3.bf16.msra.mxu1 %v10067_v37  ;;  %9499 = vmatprep.mubr.msk.f32.mxu1 %vm1393_vm3, %v10977_v45  ;;  %v11187_v37 = vld [vmem:[%s10770_s18 + $0x18] sm:$0xff] }
 0x63b   : > { %v10071_v38 = vpack.c.bf16 %v3912_v24, %v3907_v26  ;;  %v9459_v27 = vpop.f32.mrb[56].mxu0 }
 0x63c   : > { %v3922_v28 = vadd.f32 %v9459_v27, %v8433_v51  ;;  %v3916_v29 = vpop.f32.mrb[57].mxu0 }
 0x63d   : > { %v3917_v40 = vadd.f32 %v8433_v51, %v3916_v29  ;;  %9500 = vmatmul.mubr.msk.f32.vlgmr.msra.gmra.mrb[80].mxu1 %vm1393_vm3, %v10992_v53  ;;  %10072 = vmatprep.subr.bf16.mxu1 %v10071_v38  ;;  %v8498_v51 = vld [vmem:[%s11533_s6 + $0x40] sm:$0xff] }
 0x63e   : > { %10074 = vmatpush3.bf16.msra.mxu1 %v10071_v38  ;;  %9506 = vmatprep.mubr.msk.f32.mxu1 %vm1393_vm3, %v10995_v58  ;;  %v10119_v54 = vpack.c.bf16 %v8499_v52, %v8498_v51 }
 0x63f   : > { %v10075_v41 = vpack.c.bf16 %v3922_v28, %v3917_v40  ;;  %v11199_v28 = vld [vmem:[%s10770_s18 + $0x28] sm:$0xff] }
 0x640   : > { %10120 = vmatprep.subr.bf16.mxu0 %v10119_v54 }
 0x641   : > { %9507 = vmatmul.mubr.msk.f32.vlgmr.msra.gmra.mrb[82].mxu1 %vm1393_vm3, %v11008_v7  ;;  %10076 = vmatprep.subr.bf16.mxu1 %v10075_v41 }
 0x642   : > { %10078 = vmatpush3.bf16.msra.mxu1 %v10075_v41  ;;  %9513 = vmatprep.mubr.msk.f32.mxu1 %vm1393_vm3, %v11003_v5  ;;  %v11204_v41 = vld [vmem:[%s10770_s18 + $0x30] sm:$0xff] }
 0x645   : > { %9514 = vmatmul.mubr.msk.f32.vlgmr.msra.gmra.mrb[84].mxu1 %vm1393_vm3, %v11014_v9 }
 0x646   : > { %9552 = vmatprep.mubr.msk.f32.mxu1 %vm1393_vm3, %v11142_v42 }
 0x6fc   : > { %v9466_v55 = vpop.f32.mrb[70].mxu1 }
 0x6fd   : > { %10442 = vtanh.f32 %v9466_v55  ;;  %v3991_v56 = vpop.f32.mrb[71].mxu1 }
 0x6fe   : > { %10444 = vtanh.f32 %v3991_v56  ;;  %v11228_v56 = vld [vmem:[%s10770_s18 + $0x50] sm:$0xff] }
 0x700   : > { %v9473_v57 = vpop.f32.mrb[72].mxu1 }
 0x701   : > { %10446 = vtanh.f32 %v9473_v57  ;;  %v4066_v59 = vpop.f32.mrb[73].mxu1 }
 0x702   : > { %10448 = vtanh.f32 %v4066_v59 }
 0x704   : > { %v9480_v60 = vpop.f32.mrb[74].mxu1 }
 0x705   : > { %10450 = vtanh.f32 %v9480_v60  ;;  %v4141_v2 = vpop.f32.mrb[75].mxu1  ;;  %v11235_v60 = vld [vmem:[%s10770_s18 + $0x58] sm:$0xff] }
 0x706   : > { %10452 = vtanh.f32 %v4141_v2 }
 0x707   : > { %v10443_v6 = vpop.eup %10442 }
 0x708   : > { %v10445_v8 = vpop.eup %10444  ;;  %v9487_v0 = vpop.f32.mrb[76].mxu1 }
 0x709   : > { %10454 = vtanh.f32 %v9487_v0  ;;  %v4216_v11 = vpop.f32.mrb[77].mxu1  ;;  %9524 = vmatprep.mubr.msk.f32.mxu0 %vm963_vm2, %v10445_v8  ;;  %v10087_v16 = vpack.c.bf16 %v10443_v6, %v10445_v8  ;;  %v11252_v8 = vld [vmem:[%s10770_s18 + $0x70] sm:$0xff]  ;;  %v11257_v0 = vld [vmem:[%s10770_s18 + $0x78] sm:$0xff] }
 0x70a   : > { %10456 = vtanh.f32 %v4216_v11  ;;  %9525 = vmatmul.mubr.msk.f32.vlgmr.msra.gmra.mrb[8].mxu0 %vm963_vm2, %v10443_v6  ;;  %v11247_v6 = vld [vmem:[%s10770_s18 + $0x68] sm:$0xff] }
 0x70b   : > { %v10447_v13 = vpop.eup %10446  ;;  %10088 = vmatprep.subr.bf16.mxu1 %v10087_v16  ;;  %10122 = vmatpush3.bf16.msra.mxu0 %v10119_v54  ;;  %v11223_v54 = vld [vmem:[%s10770_s18 + $0x48] sm:$0xff] }
 0x70c   : > { %v10449_v31 = vpop.eup %10448  ;;  %v9494_v17 = vpop.f32.mrb[78].mxu1  ;;  %10090 = vmatpush3.bf16.msra.mxu1 %v10087_v16  ;;  %10124 = vmatprep.subr.bf16.mxu0 %v10123_v15 }
 0x70d   : > { %10458 = vtanh.f32 %v9494_v17  ;;  %v4291_v32 = vpop.f32.mrb[79].mxu1  ;;  %9527 = vmatprep.mubr.msk.f32.mxu0 %vm963_vm2, %v10449_v31  ;;  %v10091_v18 = vpack.c.bf16 %v10447_v13, %v10449_v31 }
 0x70e   : > { %10460 = vtanh.f32 %v4291_v32  ;;  %9528 = vmatmul.mubr.msk.f32.gmra.mrb[10].mxu0 %vm963_vm2, %v10447_v13 }
 0x70f   : > { %v10451_v30 = vpop.eup %10450  ;;  %9553 = vmatmul.mubr.msk.f32.vlgmr.msra.gmra.mrb[86].mxu1 %vm1393_vm3, %v11175_v33  ;;  %10092 = vmatprep.subr.bf16.mxu1 %v10091_v18 }
 0x710   : > { %v10453_v19 = vpop.eup %10452  ;;  %v9501_v35 = vpop.f32.mrb[80].mxu1  ;;  %10094 = vmatpush3.bf16.msra.mxu1 %v10091_v18  ;;  %9559 = vmatprep.mubr.msk.f32.mxu1 %vm1393_vm3, %v11180_v20 }
 0x711   : > { %10462 = vtanh.f32 %v9501_v35  ;;  %v4366_v36 = vpop.f32.mrb[81].mxu1  ;;  %9530 = vmatprep.mubr.msk.f32.mxu0 %vm963_vm2, %v10453_v19  ;;  %v10095_v21 = vpack.c.bf16 %v10451_v30, %v10453_v19  ;;  %10126 = vmatpush3.bf16.msra.mxu0 %v10123_v15 }
 0x712   : > { %10464 = vtanh.f32 %v4366_v36  ;;  %9531 = vmatmul.mubr.msk.f32.gmra.mrb[12].mxu0 %vm963_vm2, %v10451_v30 }
 0x713   : > { %v10455_v22 = vpop.eup %10454  ;;  %9560 = vmatmul.mubr.msk.f32.vlgmr.msra.gmra.mrb[88].mxu1 %vm1393_vm3, %v11187_v37  ;;  %10096 = vmatprep.subr.bf16.mxu1 %v10095_v21 }
 0x714   : > { %v10457_v23 = vpop.eup %10456  ;;  %v9508_v24 = vpop.f32.mrb[82].mxu1  ;;  %10098 = vmatpush3.bf16.msra.mxu1 %v10095_v21  ;;  %9566 = vmatprep.mubr.msk.f32.mxu1 %vm1393_vm3, %v11192_v25 }
 0x715   : > { %10466 = vtanh.f32 %v9508_v24  ;;  %v4441_v26 = vpop.f32.mrb[83].mxu1  ;;  %9533 = vmatprep.mubr.msk.f32.mxu0 %vm963_vm2, %v10457_v23  ;;  %v10099_v38 = vpack.c.bf16 %v10455_v22, %v10457_v23 }
 0x716   : > { %10468 = vtanh.f32 %v4441_v26  ;;  %9534 = vmatmul.mubr.msk.f32.gmra.mrb[14].mxu0 %vm963_vm2, %v10455_v22  ;;  %v8503_v26 = vld [vmem:[%s11534_s7 + $0x2] ss:$0 sm:$0xff] }
 0x717   : > { %v10459_v27 = vpop.eup %10458  ;;  %9567 = vmatmul.mubr.msk.f32.vlgmr.msra.gmra.mrb[90].mxu1 %vm1393_vm3, %v11199_v28  ;;  %10100 = vmatprep.subr.bf16.mxu1 %v10099_v38 }
 0x718   : > { %v10461_v29 = vpop.eup %10460  ;;  %v9515_v40 = vpop.f32.mrb[84].mxu1  ;;  %10102 = vmatpush3.bf16.msra.mxu1 %v10099_v38  ;;  %9573 = vmatprep.mubr.msk.f32.mxu1 %vm1393_vm3, %v11204_v41 }
 0x719   : > { %10470 = vtanh.f32 %v9515_v40  ;;  %v4516_v43 = vpop.f32.mrb[85].mxu1  ;;  %9536 = vmatprep.mubr.msk.f32.mxu0 %vm963_vm2, %v10461_v29  ;;  %v10103_v44 = vpack.c.bf16 %v10459_v27, %v10461_v29 }
 0x71a   : > { %10472 = vtanh.f32 %v4516_v43  ;;  %9537 = vmatmul.mubr.msk.f32.gmra.mrb[16].mxu0 %vm963_vm2, %v10459_v27 }
 0x71b   : > { %v10463_v46 = vpop.eup %10462  ;;  %9574 = vmatmul.mubr.msk.f32.vlgmr.msra.gmra.mrb[92].mxu1 %vm1393_vm3, %v11211_v48  ;;  %10104 = vmatprep.subr.bf16.mxu1 %v10103_v44 }
 0x71c   : > { %v10465_v49 = vpop.eup %10464  ;;  %10106 = vmatpush3.bf16.msra.mxu1 %v10103_v44  ;;  %9580 = vmatprep.mubr.msk.f32.mxu1 %vm1393_vm3, %v11216_v50 }
 0x71d   : > { %9539 = vmatprep.mubr.msk.f32.mxu0 %vm963_vm2, %v10465_v49  ;;  %v10107_v51 = vpack.c.bf16 %v10463_v46, %v10465_v49 }
 0x71e   : > { %9540 = vmatmul.mubr.msk.f32.gmra.mrb[18].mxu0 %vm963_vm2, %v10463_v46 }
 0x71f   : > { %v10467_v52 = vpop.eup %10466  ;;  %9581 = vmatmul.mubr.msk.f32.vlgmr.msra.gmra.mrb[94].mxu1 %vm1393_vm3, %v11223_v54  ;;  %10108 = vmatprep.subr.bf16.mxu1 %v10107_v51 }
 0x720   : > { %v10469_v55 = vpop.eup %10468  ;;  %10110 = vmatpush3.bf16.msra.mxu1 %v10107_v51  ;;  %9587 = vmatprep.mubr.msk.f32.mxu1 %vm1393_vm3, %v11228_v56 }
 0x721   : > { %9542 = vmatprep.mubr.msk.f32.mxu0 %vm963_vm2, %v10469_v55  ;;  %v10111_v57 = vpack.c.bf16 %v10467_v52, %v10469_v55 }
 0x722   : > { %9543 = vmatmul.mubr.msk.f32.gmra.mrb[20].mxu0 %vm963_vm2, %v10467_v52 }
 0x723   : > { %v10471_v59 = vpop.eup %10470  ;;  %9588 = vmatmul.mubr.msk.f32.vlgmr.msra.gmra.mrb[96].mxu1 %vm1393_vm3, %v11235_v60  ;;  %10112 = vmatprep.subr.bf16.mxu1 %v10111_v57 }
 0x724   : > { %v10473_v2 = vpop.eup %10472  ;;  %10114 = vmatpush3.bf16.msra.mxu1 %v10111_v57  ;;  %9594 = vmatprep.mubr.msk.f32.mxu1 %vm1393_vm3, %v11240_v3 }
 0x725   : > { %9545 = vmatprep.mubr.msk.f32.mxu0 %vm963_vm2, %v10473_v2  ;;  %v10115_v14 = vpack.c.bf16 %v10471_v59, %v10473_v2 }
 0x726   : > { %9546 = vmatmul.mubr.msk.f32.gmra.mrb[22].mxu0 %vm963_vm2, %v10471_v59 }
 0x727   : > { %9595 = vmatmul.mubr.msk.f32.vlgmr.msra.gmra.mrb[98].mxu1 %vm1393_vm3, %v11247_v6  ;;  %10116 = vmatprep.subr.bf16.mxu1 %v10115_v14 }
 0x728   : > { %10118 = vmatpush3.bf16.msra.mxu1 %v10115_v14  ;;  %9601 = vmatprep.mubr.msk.f32.mxu1 %vm1393_vm3, %v11252_v8 }
 0x72b   : > { %9602 = vmatmul.mubr.msk.f32.vlgmr.msra.gmra.mrb[100].mxu1 %vm1393_vm3, %v11257_v0 }
 0x72c   : > { %9640 = vmatprep.mubr.msk.f32.mxu1 %vm1393_vm3, %v10935_v61 }
 0x7e2   : > { %v9554_v15 = vpop.f32.mrb[86].mxu1 }
 0x7e3   : > { %v4816_v11 = vpop.f32.mrb[87].mxu1 }
 0x7e4   : > { %9612 = vmatprep.mubr.msk.f32.mxu0 %vm963_vm2, %v4816_v11 }
 0x7e5   : > { %9613 = vmatmul.mubr.msk.f32.vlgmr.msra.gmra.mrb[58].mxu0 %vm963_vm2, %v9554_v15 }
 0x7e6   : > { %v9561_v16 = vpop.f32.mrb[88].mxu1 }
 0x7e7   : > { %v4891_v13 = vpop.f32.mrb[89].mxu1 }
 0x7e8   : > { %9615 = vmatprep.mubr.msk.f32.mxu0 %vm963_vm2, %v4891_v13 }
 0x7e9   : > { %9616 = vmatmul.mubr.msk.f32.gmra.mrb[60].mxu0 %vm963_vm2, %v9561_v16 }
 0x7ea   : > { %v9568_v31 = vpop.f32.mrb[90].mxu1 }
 0x7eb   : > { %v4966_v17 = vpop.f32.mrb[91].mxu1 }
 0x7ec   : > { %9618 = vmatprep.mubr.msk.f32.mxu0 %vm963_vm2, %v4966_v17 }
 0x7ed   : > { %9619 = vmatmul.mubr.msk.f32.gmra.mrb[62].mxu0 %vm963_vm2, %v9568_v31 }
 0x7ee   : > { %v9575_v32 = vpop.f32.mrb[92].mxu1 }
 0x7ef   : > { %v5041_v18 = vpop.f32.mrb[93].mxu1 }
 0x7f0   : > { %9621 = vmatprep.mubr.msk.f32.mxu0 %vm963_vm2, %v5041_v18 }
 0x7f1   : > { %9622 = vmatmul.mubr.msk.f32.gmra.mrb[64].mxu0 %vm963_vm2, %v9575_v32 }
 0x7f2   : > { %v9582_v30 = vpop.f32.mrb[94].mxu1 }
 0x7f3   : > { %v5116_v19 = vpop.f32.mrb[95].mxu1 }
 0x7f4   : > { %9624 = vmatprep.mubr.msk.f32.mxu0 %vm963_vm2, %v5116_v19 }
 0x7f5   : > { %9625 = vmatmul.mubr.msk.f32.gmra.mrb[66].mxu0 %vm963_vm2, %v9582_v30 }
 0x7f6   : > { %v9589_v35 = vpop.f32.mrb[96].mxu1 }
 0x7f7   : > { %v5191_v36 = vpop.f32.mrb[97].mxu1 }
 0x7f8   : > { %9627 = vmatprep.mubr.msk.f32.mxu0 %vm963_vm2, %v5191_v36 }
 0x7f9   : > { %9628 = vmatmul.mubr.msk.f32.gmra.mrb[68].mxu0 %vm963_vm2, %v9589_v35 }
 0x7fa   : > { %v9596_v21 = vpop.f32.mrb[98].mxu1 }
 0x7fb   : > { %v5266_v22 = vpop.f32.mrb[99].mxu1 }
 0x7fc   : > { %9630 = vmatprep.mubr.msk.f32.mxu0 %vm963_vm2, %v5266_v22 }
 0x7fd   : > { %9631 = vmatmul.mubr.msk.f32.gmra.mrb[70].mxu0 %vm963_vm2, %v9596_v21 }
 0x7fe   : > { %v9603_v23 = vpop.f32.mrb[100].mxu1 }
 0x7ff   : > { %v5341_v24 = vpop.f32.mrb[101].mxu1 }
 0x800   : > { %9633 = vmatprep.mubr.msk.f32.mxu0 %vm963_vm2, %v5341_v24 }
 0x801   : > { %9634 = vmatmul.mubr.msk.f32.gmra.mrb[72].mxu0 %vm963_vm2, %v9603_v23 }
 0x8b8   : > { %v9614_v38 = vpop.f32.mrb[58].mxu0 }
 0x8b9   : > { %v5483_v27 = vadd.f32 %v9614_v38, %v8503_v26  ;;  %v5477_v29 = vpop.f32.mrb[59].mxu0 }
 0x8ba   : > { %v5478_v40 = vadd.f32 %v8503_v26, %v5477_v29 }
 0x8bc   : > { %v10127_v43 = vpack.c.bf16 %v5483_v27, %v5478_v40  ;;  %v9617_v44 = vpop.f32.mrb[60].mxu0 }
 0x8bd   : > { %v5493_v46 = vadd.f32 %v9617_v44, %v8503_v26  ;;  %v5487_v49 = vpop.f32.mrb[61].mxu0 }
 0x8be   : > { %v5488_v51 = vadd.f32 %v8503_v26, %v5487_v49  ;;  %10128 = vmatprep.subr.bf16.mxu1 %v10127_v43 }
 0x8bf   : > { %10130 = vmatpush3.bf16.msra.mxu1 %v10127_v43 }
 0x8c0   : > { %v10131_v52 = vpack.c.bf16 %v5493_v46, %v5488_v51  ;;  %v9620_v55 = vpop.f32.mrb[62].mxu0 }
 0x8c1   : > { %v5503_v57 = vadd.f32 %v9620_v55, %v8503_v26  ;;  %v5497_v59 = vpop.f32.mrb[63].mxu0 }
 0x8c2   : > { %v5498_v2 = vadd.f32 %v8503_v26, %v5497_v59  ;;  %9641 = vmatmul.mubr.msk.f32.vlgmr.msra.gmra.mrb[102].mxu1 %vm1393_vm3, %v10941_v63  ;;  %10132 = vmatprep.subr.bf16.mxu1 %v10131_v52  ;;  %v1188_v59 = vld [vmem:[%s11535_s8 + $0x78] sm:$0xff] }
 0x8c3   : > { %10134 = vmatpush3.bf16.msra.mxu1 %v10131_v52  ;;  %9647 = vmatprep.mubr.msk.f32.mxu1 %vm1393_vm3, %v10939_v62  ;;  %v1186_v52 = vld [vmem:[%s11535_s8 + $0x68] sm:$0xff] }
 0x8c4   : > { %v10135_v14 = vpack.c.bf16 %v5503_v57, %v5498_v2  ;;  %v9623_v15 = vpop.f32.mrb[64].mxu0  ;;  %v1187_v57 = vld [vmem:[%s11535_s8 + $0x70] sm:$0xff]  ;;  %v8568_v2 = vld [vmem:[%s11533_s6 + $0x60] sm:$0xff] }
 0x8c5   : > { %v5513_v11 = vadd.f32 %v9623_v15, %v8503_v26  ;;  %v5507_v16 = vpop.f32.mrb[65].mxu0 }
 0x8c6   : > { %v5508_v13 = vadd.f32 %v8503_v26, %v5507_v16  ;;  %9648 = vmatmul.mubr.msk.f32.vlgmr.msra.gmra.mrb[104].mxu1 %vm1393_vm3, %v10948_v1  ;;  %10136 = vmatprep.subr.bf16.mxu1 %v10135_v14 }
 0x8c7   : > { %10138 = vmatpush3.bf16.msra.mxu1 %v10135_v14  ;;  %9654 = vmatprep.mubr.msk.f32.mxu1 %vm1393_vm3, %v10951_v4  ;;  %v8569_v14 = vld [vmem:[%s11533_s6 + $0x68] sm:$0xff] }
 0x8c8   : > { %v10139_v31 = vpack.c.bf16 %v5513_v11, %v5508_v13  ;;  %v9626_v17 = vpop.f32.mrb[66].mxu0  ;;  %v10199_v15 = vpack.c.bf16 %v8569_v14, %v8568_v2 }
 0x8c9   : > { %v5523_v32 = vadd.f32 %v9626_v17, %v8503_v26  ;;  %v5517_v18 = vpop.f32.mrb[67].mxu0 }
 0x8ca   : > { %v5518_v30 = vadd.f32 %v8503_v26, %v5517_v18  ;;  %9655 = vmatmul.mubr.msk.f32.vlgmr.msra.gmra.mrb[106].mxu1 %vm1393_vm3, %v10958_v12  ;;  %10140 = vmatprep.subr.bf16.mxu1 %v10139_v31  ;;  %v8570_v18 = vld [vmem:[%s11533_s6 + $0x70] sm:$0xff] }
 0x8cb   : > { %10142 = vmatpush3.bf16.msra.mxu1 %v10139_v31  ;;  %9661 = vmatprep.mubr.msk.f32.mxu1 %vm1393_vm3, %v10955_v10 }
 0x8cc   : > { %v10143_v19 = vpack.c.bf16 %v5523_v32, %v5518_v30  ;;  %v9629_v35 = vpop.f32.mrb[68].mxu0  ;;  %v8571_v30 = vld [vmem:[%s11533_s6 + $0x78] sm:$0xff] }
 0x8cd   : > { %v5533_v36 = vadd.f32 %v9629_v35, %v8503_v26  ;;  %v5527_v21 = vpop.f32.mrb[69].mxu0 }
 0x8ce   : > { %v5528_v22 = vadd.f32 %v8503_v26, %v5527_v21  ;;  %9662 = vmatmul.mubr.msk.f32.vlgmr.msra.gmra.mrb[108].mxu1 %vm1393_vm3, %v10966_v34  ;;  %10144 = vmatprep.subr.bf16.mxu1 %v10143_v19  ;;  %v10203_v21 = vpack.c.bf16 %v8571_v30, %v8570_v18 }
 0x8cf   : > { %10146 = vmatpush3.bf16.msra.mxu1 %v10143_v19  ;;  %9668 = vmatprep.mubr.msk.f32.mxu1 %vm1393_vm3, %v10969_v39 }
 0x8d0   : > { %v10147_v23 = vpack.c.bf16 %v5533_v36, %v5528_v22  ;;  %v9632_v24 = vpop.f32.mrb[70].mxu0 }
 0x8d1   : > { %v5543_v38 = vadd.f32 %v9632_v24, %v8503_v26  ;;  %v5537_v27 = vpop.f32.mrb[71].mxu0 }
 0x8d2   : > { %v5538_v29 = vadd.f32 %v8503_v26, %v5537_v27  ;;  %9669 = vmatmul.mubr.msk.f32.vlgmr.msra.gmra.mrb[110].mxu1 %vm1393_vm3, %v10984_v47  ;;  %10148 = vmatprep.subr.bf16.mxu1 %v10147_v23 }
 0x8d3   : > { %10150 = vmatpush3.bf16.msra.mxu1 %v10147_v23  ;;  %9675 = vmatprep.mubr.msk.f32.mxu1 %vm1393_vm3, %v10977_v45 }
 0x8d4   : > { %v10151_v40 = vpack.c.bf16 %v5543_v38, %v5538_v29  ;;  %v9635_v43 = vpop.f32.mrb[72].mxu0 }
 0x8d5   : > { %v5553_v44 = vadd.f32 %v9635_v43, %v8503_v26  ;;  %v5547_v46 = vpop.f32.mrb[73].mxu0 }
 0x8d6   : > { %v5548_v49 = vadd.f32 %v8503_v26, %v5547_v46  ;;  %9676 = vmatmul.mubr.msk.f32.vlgmr.msra.gmra.mrb[112].mxu1 %vm1393_vm3, %v10992_v53  ;;  %10152 = vmatprep.subr.bf16.mxu1 %v10151_v40  ;;  %v1185_v26 = vld [vmem:[%s11535_s8 + $0x60] sm:$0xff] }
 0x8d7   : > { %10154 = vmatpush3.bf16.msra.mxu1 %v10151_v40  ;;  %9682 = vmatprep.mubr.msk.f32.mxu1 %vm1393_vm3, %v10995_v58  ;;  %v10159_v55 = vpack.c.bf16 %v1186_v52, %v1185_v26 }
 0x8d8   : > { %v10155_v51 = vpack.c.bf16 %v5553_v44, %v5548_v49 }
 0x8d9   : > { %10160 = vmatprep.subr.bf16.mxu0 %v10159_v55 }
 0x8da   : > { %9683 = vmatmul.mubr.msk.f32.vlgmr.msra.gmra.mrb[114].mxu1 %vm1393_vm3, %v11008_v7  ;;  %10156 = vmatprep.subr.bf16.mxu1 %v10155_v51 }
 0x8db   : > { %10158 = vmatpush3.bf16.msra.mxu1 %v10155_v51  ;;  %9689 = vmatprep.mubr.msk.f32.mxu1 %vm1393_vm3, %v11003_v5 }
 0x8dc   : > { %10162 = vmatpush3.bf16.msra.mxu0 %v10159_v55 }
 0x8de   : > { %9690 = vmatmul.mubr.msk.f32.vlgmr.msra.gmra.mrb[116].mxu1 %vm1393_vm3, %v11014_v9 }
 0x8df   : > { %9728 = vmatprep.mubr.msk.f32.mxu1 %vm1393_vm3, %v11142_v42  ;;  %v10163_v42 = vpack.c.bf16 %v1188_v59, %v1187_v57 }
 0x8e1   : > { %10164 = vmatprep.subr.bf16.mxu0 %v10163_v42 }
 0x8e2   : > { %10166 = vmatpush3.bf16.msra.mxu0 %v10163_v42 }
 0x8e3   : > { %10200 = vmatprep.subr.bf16.mxu0 %v10199_v15 }
 0x995   : > { %v9642_v11 = vpop.f32.mrb[102].mxu1 }
 0x996   : > { %10474 = vtanh.f32 %v9642_v11  ;;  %v5622_v16 = vpop.f32.mrb[103].mxu1 }
 0x997   : > { %10476 = vtanh.f32 %v5622_v16 }
 0x999   : > { %v9649_v13 = vpop.f32.mrb[104].mxu1 }
 0x99a   : > { %10478 = vtanh.f32 %v9649_v13  ;;  %v5697_v31 = vpop.f32.mrb[105].mxu1 }
 0x99b   : > { %10480 = vtanh.f32 %v5697_v31 }
 0x99d   : > { %v9656_v17 = vpop.f32.mrb[106].mxu1 }
 0x99e   : > { %10482 = vtanh.f32 %v9656_v17  ;;  %v5772_v32 = vpop.f32.mrb[107].mxu1 }
 0x99f   : > { %10484 = vtanh.f32 %v5772_v32 }
 0x9a0   : > { %v10475_v19 = vpop.eup %10474 }
 0x9a1   : > { %v10477_v35 = vpop.eup %10476  ;;  %v9663_v36 = vpop.f32.mrb[108].mxu1 }
 0x9a2   : > { %10486 = vtanh.f32 %v9663_v36  ;;  %v5847_v22 = vpop.f32.mrb[109].mxu1  ;;  %9700 = vmatprep.mubr.msk.f32.mxu0 %vm963_vm2, %v10477_v35  ;;  %v10167_v23 = vpack.c.bf16 %v10475_v19, %v10477_v35  ;;  %v8573_v36 = vld [vmem:[%s11534_s7 + $0x3] ss:$0 sm:$0xff] }
 0x9a3   : > { %10488 = vtanh.f32 %v5847_v22  ;;  %9701 = vmatmul.mubr.msk.f32.vlgmr.msra.gmra.mrb[8].mxu0 %vm963_vm2, %v10475_v19 }
 0x9a4   : > { %v10479_v24 = vpop.eup %10478  ;;  %10168 = vmatprep.subr.bf16.mxu1 %v10167_v23  ;;  %10202 = vmatpush3.bf16.msra.mxu0 %v10199_v15 }
 0x9a5   : > { %v10481_v38 = vpop.eup %10480  ;;  %v9670_v27 = vpop.f32.mrb[110].mxu1  ;;  %10170 = vmatpush3.bf16.msra.mxu1 %v10167_v23  ;;  %10204 = vmatprep.subr.bf16.mxu0 %v10203_v21 }
 0x9a6   : > { %10490 = vtanh.f32 %v9670_v27  ;;  %v5922_v29 = vpop.f32.mrb[111].mxu1  ;;  %9703 = vmatprep.mubr.msk.f32.mxu0 %vm963_vm2, %v10481_v38  ;;  %v10171_v40 = vpack.c.bf16 %v10479_v24, %v10481_v38 }
 0x9a7   : > { %10492 = vtanh.f32 %v5922_v29  ;;  %9704 = vmatmul.mubr.msk.f32.gmra.mrb[10].mxu0 %vm963_vm2, %v10479_v24 }
 0x9a8   : > { %v10483_v43 = vpop.eup %10482  ;;  %9729 = vmatmul.mubr.msk.f32.vlgmr.msra.gmra.mrb[118].mxu1 %vm1393_vm3, %v11175_v33  ;;  %10172 = vmatprep.subr.bf16.mxu1 %v10171_v40 }
 0x9a9   : > { %v10485_v44 = vpop.eup %10484  ;;  %v9677_v46 = vpop.f32.mrb[112].mxu1  ;;  %10174 = vmatpush3.bf16.msra.mxu1 %v10171_v40  ;;  %9735 = vmatprep.mubr.msk.f32.mxu1 %vm1393_vm3, %v11180_v20 }
 0x9aa   : > { %10494 = vtanh.f32 %v9677_v46  ;;  %v5997_v49 = vpop.f32.mrb[113].mxu1  ;;  %9706 = vmatprep.mubr.msk.f32.mxu0 %vm963_vm2, %v10485_v44  ;;  %v10175_v51 = vpack.c.bf16 %v10483_v43, %v10485_v44  ;;  %10206 = vmatpush3.bf16.msra.mxu0 %v10203_v21 }
 0x9ab   : > { %10496 = vtanh.f32 %v5997_v49  ;;  %9707 = vmatmul.mubr.msk.f32.gmra.mrb[12].mxu0 %vm963_vm2, %v10483_v43 }
 0x9ac   : > { %v10487_v26 = vpop.eup %10486  ;;  %9736 = vmatmul.mubr.msk.f32.vlgmr.msra.gmra.mrb[120].mxu1 %vm1393_vm3, %v11187_v37  ;;  %10176 = vmatprep.subr.bf16.mxu1 %v10175_v51 }
 0x9ad   : > { %v10489_v33 = vpop.eup %10488  ;;  %v9684_v52 = vpop.f32.mrb[114].mxu1  ;;  %10178 = vmatpush3.bf16.msra.mxu1 %v10175_v51  ;;  %9742 = vmatprep.mubr.msk.f32.mxu1 %vm1393_vm3, %v11192_v25 }
 0x9ae   : > { %10498 = vtanh.f32 %v9684_v52  ;;  %v6072_v20 = vpop.f32.mrb[115].mxu1  ;;  %9709 = vmatprep.mubr.msk.f32.mxu0 %vm963_vm2, %v10489_v33  ;;  %v10179_v55 = vpack.c.bf16 %v10487_v26, %v10489_v33 }
 0x9af   : > { %10500 = vtanh.f32 %v6072_v20  ;;  %9710 = vmatmul.mubr.msk.f32.gmra.mrb[14].mxu0 %vm963_vm2, %v10487_v26 }
 0x9b0   : > { %v10491_v57 = vpop.eup %10490  ;;  %9743 = vmatmul.mubr.msk.f32.vlgmr.msra.gmra.mrb[122].mxu1 %vm1393_vm3, %v11199_v28  ;;  %10180 = vmatprep.subr.bf16.mxu1 %v10179_v55 }
 0x9b1   : > { %v10493_v37 = vpop.eup %10492  ;;  %v9691_v59 = vpop.f32.mrb[116].mxu1  ;;  %10182 = vmatpush3.bf16.msra.mxu1 %v10179_v55  ;;  %9749 = vmatprep.mubr.msk.f32.mxu1 %vm1393_vm3, %v11204_v41 }
 0x9b2   : > { %10502 = vtanh.f32 %v9691_v59  ;;  %v6147_v25 = vpop.f32.mrb[117].mxu1  ;;  %9712 = vmatprep.mubr.msk.f32.mxu0 %vm963_vm2, %v10493_v37  ;;  %v10183_v42 = vpack.c.bf16 %v10491_v57, %v10493_v37 }
 0x9b3   : > { %10504 = vtanh.f32 %v6147_v25  ;;  %9713 = vmatmul.mubr.msk.f32.gmra.mrb[16].mxu0 %vm963_vm2, %v10491_v57 }
 0x9b4   : > { %v10495_v2 = vpop.eup %10494  ;;  %9750 = vmatmul.mubr.msk.f32.vlgmr.msra.gmra.mrb[124].mxu1 %vm1393_vm3, %v11211_v48  ;;  %10184 = vmatprep.subr.bf16.mxu1 %v10183_v42 }
 0x9b5   : > { %v10497_v28 = vpop.eup %10496  ;;  %10186 = vmatpush3.bf16.msra.mxu1 %v10183_v42  ;;  %9756 = vmatprep.mubr.msk.f32.mxu1 %vm1393_vm3, %v11216_v50 }
 0x9b6   : > { %9715 = vmatprep.mubr.msk.f32.mxu0 %vm963_vm2, %v10497_v28  ;;  %v10187_v41 = vpack.c.bf16 %v10495_v2, %v10497_v28 }
 0x9b7   : > { %9716 = vmatmul.mubr.msk.f32.gmra.mrb[18].mxu0 %vm963_vm2, %v10495_v2 }
 0x9b8   : > { %v10499_v14 = vpop.eup %10498  ;;  %9757 = vmatmul.mubr.msk.f32.vlgmr.msra.gmra.mrb[126].mxu1 %vm1393_vm3, %v11223_v54  ;;  %10188 = vmatprep.subr.bf16.mxu1 %v10187_v41 }
 0x9b9   : > { %v10501_v15 = vpop.eup %10500  ;;  %10190 = vmatpush3.bf16.msra.mxu1 %v10187_v41  ;;  %9763 = vmatprep.mubr.msk.f32.mxu1 %vm1393_vm3, %v11228_v56 }
 0x9ba   : > { %9718 = vmatprep.mubr.msk.f32.mxu0 %vm963_vm2, %v10501_v15  ;;  %v10191_v48 = vpack.c.bf16 %v10499_v14, %v10501_v15 }
 0x9bb   : > { %9719 = vmatmul.mubr.msk.f32.gmra.mrb[20].mxu0 %vm963_vm2, %v10499_v14 }
 0x9bc   : > { %v10503_v50 = vpop.eup %10502  ;;  %9764 = vmatmul.mubr.msk.f32.vlgmr.msra.gmra.mrb[128].mxu1 %vm1393_vm3, %v11235_v60  ;;  %10192 = vmatprep.subr.bf16.mxu1 %v10191_v48 }
 0x9bd   : > { %v10505_v11 = vpop.eup %10504  ;;  %10194 = vmatpush3.bf16.msra.mxu1 %v10191_v48  ;;  %9770 = vmatprep.mubr.msk.f32.mxu1 %vm1393_vm3, %v11240_v3 }
 0x9be   : > { %9721 = vmatprep.mubr.msk.f32.mxu0 %vm963_vm2, %v10505_v11  ;;  %v10195_v54 = vpack.c.bf16 %v10503_v50, %v10505_v11 }
 0x9bf   : > { %9722 = vmatmul.mubr.msk.f32.gmra.mrb[22].mxu0 %vm963_vm2, %v10503_v50 }
 0x9c0   : > { %9771 = vmatmul.mubr.msk.f32.vlgmr.msra.gmra.mrb[130].mxu1 %vm1393_vm3, %v11247_v6  ;;  %10196 = vmatprep.subr.bf16.mxu1 %v10195_v54 }
 0x9c1   : > { %10198 = vmatpush3.bf16.msra.mxu1 %v10195_v54  ;;  %9777 = vmatprep.mubr.msk.f32.mxu1 %vm1393_vm3, %v11252_v8 }
 0x9c4   : > { %9778 = vmatmul.mubr.msk.f32.vlgmr.msra.gmra.mrb[132].mxu1 %vm1393_vm3, %v11257_v0 }
 0x9c5   : > { %9816 = vmatprep.mubr.msk.f32.mxu1 %vm1393_vm3, %v10935_v61 }
 0xa7b   : > { %v9730_v56 = vpop.f32.mrb[118].mxu1 }
 0xa7c   : > { %v6447_v60 = vpop.f32.mrb[119].mxu1 }
 0xa7d   : > { %9788 = vmatprep.mubr.msk.f32.mxu0 %vm963_vm2, %v6447_v60 }
 0xa7e   : > { %9789 = vmatmul.mubr.msk.f32.vlgmr.msra.gmra.mrb[74].mxu0 %vm963_vm2, %v9730_v56 }
 0xa7f   : > { %v9737_v3 = vpop.f32.mrb[120].mxu1 }
 0xa80   : > { %v6522_v16 = vpop.f32.mrb[121].mxu1 }
 0xa81   : > { %9791 = vmatprep.mubr.msk.f32.mxu0 %vm963_vm2, %v6522_v16 }
 0xa82   : > { %9792 = vmatmul.mubr.msk.f32.gmra.mrb[76].mxu0 %vm963_vm2, %v9737_v3 }
 0xa83   : > { %v9744_v6 = vpop.f32.mrb[122].mxu1 }
 0xa84   : > { %v6597_v8 = vpop.f32.mrb[123].mxu1 }
 0xa85   : > { %9794 = vmatprep.mubr.msk.f32.mxu0 %vm963_vm2, %v6597_v8 }
 0xa86   : > { %9795 = vmatmul.mubr.msk.f32.gmra.mrb[78].mxu0 %vm963_vm2, %v9744_v6 }
 0xa87   : > { %v9751_v0 = vpop.f32.mrb[124].mxu1 }
 0xa88   : > { %v6672_v61 = vpop.f32.mrb[125].mxu1 }
 0xa89   : > { %9797 = vmatprep.mubr.msk.f32.mxu0 %vm963_vm2, %v6672_v61 }
 0xa8a   : > { %9798 = vmatmul.mubr.msk.f32.gmra.mrb[80].mxu0 %vm963_vm2, %v9751_v0 }
 0xa8b   : > { %v9758_v13 = vpop.f32.mrb[126].mxu1 }
 0xa8c   : > { %v6747_v31 = vpop.f32.mrb[127].mxu1 }
 0xa8d   : > { %9800 = vmatprep.mubr.msk.f32.mxu0 %vm963_vm2, %v6747_v31 }
 0xa8e   : > { %9801 = vmatmul.mubr.msk.f32.gmra.mrb[82].mxu0 %vm963_vm2, %v9758_v13 }
 0xa8f   : > { %v9765_v17 = vpop.f32.mrb[128].mxu1 }
 0xa90   : > { %v6822_v32 = vpop.f32.mrb[129].mxu1 }
 0xa91   : > { %9803 = vmatprep.mubr.msk.f32.mxu0 %vm963_vm2, %v6822_v32 }
 0xa92   : > { %9804 = vmatmul.mubr.msk.f32.gmra.mrb[84].mxu0 %vm963_vm2, %v9765_v17 }
 0xa93   : > { %v9772_v18 = vpop.f32.mrb[130].mxu1 }
 0xa94   : > { %v6897_v30 = vpop.f32.mrb[131].mxu1 }
 0xa95   : > { %9806 = vmatprep.mubr.msk.f32.mxu0 %vm963_vm2, %v6897_v30 }
 0xa96   : > { %9807 = vmatmul.mubr.msk.f32.gmra.mrb[86].mxu0 %vm963_vm2, %v9772_v18 }
 0xa97   : > { %v9779_v19 = vpop.f32.mrb[132].mxu1 }
 0xa98   : > { %v6972_v35 = vpop.f32.mrb[133].mxu1 }
 0xa99   : > { %9809 = vmatprep.mubr.msk.f32.mxu0 %vm963_vm2, %v6972_v35 }
 0xa9a   : > { %9810 = vmatmul.mubr.msk.f32.gmra.mrb[88].mxu0 %vm963_vm2, %v9779_v19 }
 0xb51   : > { %v9790_v21 = vpop.f32.mrb[74].mxu0 }
 0xb52   : > { %v7114_v22 = vadd.f32 %v9790_v21, %v8573_v36  ;;  %v7108_v23 = vpop.f32.mrb[75].mxu0 }
 0xb53   : > { %v7109_v24 = vadd.f32 %v8573_v36, %v7108_v23 }
 0xb55   : > { %v10207_v38 = vpack.c.bf16 %v7114_v22, %v7109_v24  ;;  %v9793_v27 = vpop.f32.mrb[76].mxu0 }
 0xb56   : > { %v7124_v29 = vadd.f32 %v9793_v27, %v8573_v36  ;;  %v7118_v40 = vpop.f32.mrb[77].mxu0 }
 0xb57   : > { %v7119_v43 = vadd.f32 %v8573_v36, %v7118_v40  ;;  %10208 = vmatprep.subr.bf16.mxu1 %v10207_v38 }
 0xb58   : > { %10210 = vmatpush3.bf16.msra.mxu1 %v10207_v38 }
 0xb59   : > { %v10211_v44 = vpack.c.bf16 %v7124_v29, %v7119_v43  ;;  %v9796_v46 = vpop.f32.mrb[78].mxu0 }
 0xb5a   : > { %v7134_v49 = vadd.f32 %v9796_v46, %v8573_v36  ;;  %v7128_v51 = vpop.f32.mrb[79].mxu0 }
 0xb5b   : > { %v7129_v26 = vadd.f32 %v8573_v36, %v7128_v51  ;;  %9817 = vmatmul.mubr.msk.f32.vlgmr.msra.gmra.mrb[134].mxu1 %vm1393_vm3, %v10941_v63  ;;  %10212 = vmatprep.subr.bf16.mxu1 %v10211_v44 }
 0xb5c   : > { %10214 = vmatpush3.bf16.msra.mxu1 %v10211_v44  ;;  %9823 = vmatprep.mubr.msk.f32.mxu1 %vm1393_vm3, %v10939_v62 }
 0xb5d   : > { %v10215_v33 = vpack.c.bf16 %v7134_v49, %v7129_v26  ;;  %v9799_v52 = vpop.f32.mrb[80].mxu0 }
 0xb5e   : > { %v7144_v20 = vadd.f32 %v9799_v52, %v8573_v36  ;;  %v7138_v55 = vpop.f32.mrb[81].mxu0  ;;  %v8101_v52 = vld [vmem:[%s11537_s10 + $0x8] sm:$0xff] }
 0xb5f   : > { %v7139_v57 = vadd.f32 %v8573_v36, %v7138_v55  ;;  %9824 = vmatmul.mubr.msk.f32.vlgmr.msra.gmra.mrb[136].mxu1 %vm1393_vm3, %v10948_v1  ;;  %10216 = vmatprep.subr.bf16.mxu1 %v10215_v33  ;;  %v10598_v55 = vmov 0.0|0.0  }
 0xb60   : > { %10218 = vmatpush3.bf16.msra.mxu1 %v10215_v33  ;;  %9830 = vmatprep.mubr.msk.f32.mxu1 %vm1393_vm3, %v10951_v4  ;;  %v8100_v33 = vld [vmem:[%s11537_s10] sm:$0xff] }
 0xb61   : > { %v10219_v37 = vpack.c.bf16 %v7144_v20, %v7139_v57  ;;  %v9802_v63 = vpop.f32.mrb[82].mxu0  ;;  %v8102_v20 = vld [vmem:[%s11537_s10 + $0x10] sm:$0xff]  ;;  %v10248_v57 = vpack.c.bf16 %v8101_v52, %v8100_v33 }
 0xb62   : > { %v7154_v59 = vadd.f32 %v9802_v63, %v8573_v36  ;;  %v7148_v25 = vpop.f32.mrb[83].mxu0  ;;  %v10600_v63 = vmov 0.0  }
 0xb63   : > { %v7149_v42 = vadd.f32 %v8573_v36, %v7148_v25  ;;  %9831 = vmatmul.mubr.msk.f32.vlgmr.msra.gmra.mrb[138].mxu1 %vm1393_vm3, %v10958_v12  ;;  %10220 = vmatprep.subr.bf16.mxu1 %v10219_v37  ;;  %v11478_v25 = vld [vmem:[%s11536_s9] ss:$0 sm:$0xff] }
 0xb64   : > { %10222 = vmatpush3.bf16.msra.mxu1 %v10219_v37  ;;  %9837 = vmatprep.mubr.msk.f32.mxu1 %vm1393_vm3, %v10955_v10  ;;  %v8103_v37 = vld [vmem:[%s11537_s10 + $0x18] sm:$0xff] }
 0xb65   : > { %v10223_v62 = vpack.c.bf16 %v7154_v59, %v7149_v42  ;;  %v9805_v1 = vpop.f32.mrb[84].mxu0  ;;  %v10251_v59 = vpack.c.bf16 %v8103_v37, %v8102_v20 }
 0xb66   : > { %v7164_v2 = vadd.f32 %v9805_v1, %v8573_v36  ;;  %v7158_v28 = vpop.f32.mrb[85].mxu0 }
 0xb67   : > { %v7159_v41 = vadd.f32 %v8573_v36, %v7158_v28  ;;  %9838 = vmatmul.mubr.msk.f32.vlgmr.msra.gmra.mrb[140].mxu1 %vm1393_vm3, %v10966_v34  ;;  %10224 = vmatprep.subr.bf16.mxu1 %v10223_v62 }
 0xb68   : > { %10226 = vmatpush3.bf16.msra.mxu1 %v10223_v62  ;;  %9844 = vmatprep.mubr.msk.f32.mxu1 %vm1393_vm3, %v10969_v39 }
 0xb69   : > { %v10227_v4 = vpack.c.bf16 %v7164_v2, %v7159_v41  ;;  %v9808_v12 = vpop.f32.mrb[86].mxu0 }
 0xb6a   : > { %v7174_v14 = vadd.f32 %v9808_v12, %v8573_v36  ;;  %v7168_v15 = vpop.f32.mrb[87].mxu0 }
 0xb6b   : > { %v7169_v48 = vadd.f32 %v8573_v36, %v7168_v15  ;;  %9845 = vmatmul.mubr.msk.f32.vlgmr.msra.gmra.mrb[142].mxu1 %vm1393_vm3, %v10984_v47  ;;  %10228 = vmatprep.subr.bf16.mxu1 %v10227_v4  ;;  %v1190_v47 = vld [vmem:[%s11535_s8 + $0x88] sm:$0xff] }
 0xb6c   : > { %10230 = vmatpush3.bf16.msra.mxu1 %v10227_v4  ;;  %9851 = vmatprep.mubr.msk.f32.mxu1 %vm1393_vm3, %v10977_v45  ;;  %v1189_v45 = vld [vmem:[%s11535_s8 + $0x80] sm:$0xff] }
 0xb6d   : > { %v10231_v10 = vpack.c.bf16 %v7174_v14, %v7169_v48  ;;  %v9811_v34 = vpop.f32.mrb[88].mxu0 }
 0xb6e   : > { %v7184_v50 = vadd.f32 %v9811_v34, %v8573_v36  ;;  %v7178_v11 = vpop.f32.mrb[89].mxu0 }
 0xb6f   : > { %v7179_v54 = vadd.f32 %v8573_v36, %v7178_v11  ;;  %9852 = vmatmul.mubr.msk.f32.vlgmr.msra.gmra.mrb[144].mxu1 %vm1393_vm3, %v10992_v53  ;;  %10232 = vmatprep.subr.bf16.mxu1 %v10231_v10  ;;  %v10239_v53 = vpack.c.bf16 %v1190_v47, %v1189_v45 }
 0xb70   : > { %10234 = vmatpush3.bf16.msra.mxu1 %v10231_v10  ;;  %9858 = vmatprep.mubr.msk.f32.mxu1 %vm1393_vm3, %v10995_v58  ;;  %v1191_v58 = vld [vmem:[%s11535_s8 + $0x90] sm:$0xff] }
 0xb71   : > { %v10235_v39 = vpack.c.bf16 %v7184_v50, %v7179_v54  ;;  %10240 = vmatprep.subr.bf16.mxu0 %v10239_v53 }
 0xb72   : > { %10242 = vmatpush3.bf16.msra.mxu0 %v10239_v53 }
 0xb73   : > { %9859 = vmatmul.mubr.msk.f32.vlgmr.msra.gmra.mrb[146].mxu1 %vm1393_vm3, %v11008_v7  ;;  %10236 = vmatprep.subr.bf16.mxu1 %v10235_v39 }
 0xb74   : > { %10238 = vmatpush3.bf16.msra.mxu1 %v10235_v39  ;;  %9865 = vmatprep.mubr.msk.f32.mxu1 %vm1393_vm3, %v11003_v5  ;;  %v1192_v5 = vld [vmem:[%s11535_s8 + $0x98] sm:$0xff] }
 0xb75   : > { %v10243_v7 = vpack.c.bf16 %v1192_v5, %v1191_v58  ;;  %10247 = vmatprep.subr.bf16.mxu1 %v10598_v55 }
 0xb77   : > { %9866 = vmatmul.mubr.msk.f32.vlgmr.msra.gmra.mrb[148].mxu1 %vm1393_vm3, %v11014_v9  ;;  %10244 = vmatprep.subr.bf16.mxu0 %v10243_v7 }
 0xb78   : > { %10246 = vmatpush3.bf16.msra.mxu0 %v10243_v7  ;;  %9908 = vmatprep.mubr.msk.f32.mxu1 %vm10599_vm4, %v10600_v63 }
 0xb79   : > { %10249 = vmatpush3.bf16.msra.mxu1 %v10248_v57 }
 0xb7a   : > { %10250 = vmatprep.subr.bf16.mxu1 %v10598_v55 }
 0xb7d   : > { %10252 = vmatpush3.bf16.msra.mxu1 %v10251_v59 }
 0xc2e   : > { %v9818_v9 = vpop.f32.mrb[134].mxu1 }
 0xc2f   : > { %v7253_v56 = vpop.f32.mrb[135].mxu1 }
 0xc30   : > { %10506 = vtanh.f32 %v7253_v56 }
 0xc31   : > { %10508 = vtanh.f32 %v9818_v9 }
 0xc32   : > { %v9825_v60 = vpop.f32.mrb[136].mxu1 }
 0xc33   : > { %v7328_v3 = vpop.f32.mrb[137].mxu1 }
 0xc34   : > { %10510 = vtanh.f32 %v7328_v3 }
 0xc35   : > { %10512 = vtanh.f32 %v9825_v60 }
 0xc36   : > { %v9832_v16 = vpop.f32.mrb[138].mxu1 }
 0xc37   : > { %v7403_v6 = vpop.f32.mrb[139].mxu1 }
 0xc38   : > { %10514 = vtanh.f32 %v7403_v6 }
 0xc39   : > { %10516 = vtanh.f32 %v9832_v16 }
 0xc3a   : > { %v10507_v8 = vpop.eup %10506  ;;  %v9839_v0 = vpop.f32.mrb[140].mxu1 }
 0xc3b   : > { %v10509_v61 = vpop.eup %10508  ;;  %v7478_v13 = vpop.f32.mrb[141].mxu1  ;;  %9876 = vmatprep.mubr.msk.f32.mxu0 %vm963_vm2, %v10507_v8 }
 0xc3c   : > { %10518 = vtanh.f32 %v7478_v13  ;;  %9877 = vmatmul.mubr.msk.f32.vlgmr.msra.gmra.mrb[8].mxu0 %vm963_vm2, %v10509_v61 }
 0xc3d   : > { %10520 = vtanh.f32 %v9839_v0 }
 0xc3e   : > { %v10511_v31 = vpop.eup %10510  ;;  %v9846_v17 = vpop.f32.mrb[142].mxu1 }
 0xc3f   : > { %v10513_v32 = vpop.eup %10512  ;;  %v7553_v18 = vpop.f32.mrb[143].mxu1  ;;  %9879 = vmatprep.mubr.msk.f32.mxu0 %vm963_vm2, %v10511_v31 }
 0xc40   : > { %10522 = vtanh.f32 %v7553_v18  ;;  %9880 = vmatmul.mubr.msk.f32.gmra.mrb[10].mxu0 %vm963_vm2, %v10513_v32 }
 0xc41   : > { %10524 = vtanh.f32 %v9846_v17 }
 0xc42   : > { %v10515_v30 = vpop.eup %10514  ;;  %v9853_v19 = vpop.f32.mrb[144].mxu1 }
 0xc43   : > { %v10517_v35 = vpop.eup %10516  ;;  %v7628_v36 = vpop.f32.mrb[145].mxu1  ;;  %9882 = vmatprep.mubr.msk.f32.mxu0 %vm963_vm2, %v10515_v30 }
 0xc44   : > { %10526 = vtanh.f32 %v7628_v36  ;;  %9883 = vmatmul.mubr.msk.f32.gmra.mrb[12].mxu0 %vm963_vm2, %v10517_v35 }
 0xc45   : > { %10528 = vtanh.f32 %v9853_v19 }
 0xc46   : > { %v10519_v21 = vpop.eup %10518  ;;  %v9860_v22 = vpop.f32.mrb[146].mxu1 }
 0xc47   : > { %v10521_v23 = vpop.eup %10520  ;;  %v7703_v24 = vpop.f32.mrb[147].mxu1  ;;  %9885 = vmatprep.mubr.msk.f32.mxu0 %vm963_vm2, %v10519_v21 }
 0xc48   : > { %10530 = vtanh.f32 %v7703_v24  ;;  %9886 = vmatmul.mubr.msk.f32.gmra.mrb[14].mxu0 %vm963_vm2, %v10521_v23 }
 0xc49   : > { %10532 = vtanh.f32 %v9860_v22 }
 0xc4a   : > { %v10523_v38 = vpop.eup %10522  ;;  %v9867_v27 = vpop.f32.mrb[148].mxu1 }
 0xc4b   : > { %v10525_v29 = vpop.eup %10524  ;;  %v7778_v40 = vpop.f32.mrb[149].mxu1  ;;  %9888 = vmatprep.mubr.msk.f32.mxu0 %vm963_vm2, %v10523_v38 }
 0xc4c   : > { %10534 = vtanh.f32 %v7778_v40  ;;  %9889 = vmatmul.mubr.msk.f32.gmra.mrb[16].mxu0 %vm963_vm2, %v10525_v29 }
 0xc4d   : > { %10536 = vtanh.f32 %v9867_v27 }
 0xc4e   : > { %v10527_v43 = vpop.eup %10526 }
 0xc4f   : > { %v10529_v44 = vpop.eup %10528  ;;  %9891 = vmatprep.mubr.msk.f32.mxu0 %vm963_vm2, %v10527_v43 }
 0xc50   : > { %9892 = vmatmul.mubr.msk.f32.gmra.mrb[18].mxu0 %vm963_vm2, %v10529_v44 }
 0xc52   : > { %v10531_v46 = vpop.eup %10530 }
 0xc53   : > { %v10533_v49 = vpop.eup %10532  ;;  %9894 = vmatprep.mubr.msk.f32.mxu0 %vm963_vm2, %v10531_v46 }
 0xc54   : > { %9895 = vmatmul.mubr.msk.f32.gmra.mrb[20].mxu0 %vm963_vm2, %v10533_v49 }
 0xc56   : > { %v10535_v51 = vpop.eup %10534 }
 0xc57   : > { %v10537_v26 = vpop.eup %10536  ;;  %9897 = vmatprep.mubr.msk.f32.mxu0 %vm963_vm2, %v10535_v51 }
 0xc58   : > { %9898 = vmatmul.mubr.msk.f32.gmra.mrb[22].mxu0 %vm963_vm2, %v10537_v26 }
 0xd0f   : > { %v9878_v42 = vpop.f32.mrb[8].mxu0 }
 0xd10   : > { %v10255_v62 = vadd.f32 %v9878_v42, %v11478_v25  ;;  %v7917_v1 = vpop.f32.mrb[9].mxu0 }
 0xd11   : > { %v10256_v2 = vadd.f32 %v11478_v25, %v7917_v1 }
 0xd12   : > { %10538 = vtanh.f32 %v10255_v62 }
 0xd13   : > { %10540 = vtanh.f32 %v10256_v2  ;;  %v9881_v28 = vpop.f32.mrb[10].mxu0 }
 0xd14   : > { %v10257_v41 = vadd.f32 %v9881_v28, %v11478_v25  ;;  %v7927_v4 = vpop.f32.mrb[11].mxu0 }
 0xd15   : > { %v10258_v12 = vadd.f32 %v11478_v25, %v7927_v4 }
 0xd16   : > { %10542 = vtanh.f32 %v10257_v41 }
 0xd17   : > { %10544 = vtanh.f32 %v10258_v12  ;;  %v9884_v14 = vpop.f32.mrb[12].mxu0 }
 0xd18   : > { %v10259_v15 = vadd.f32 %v9884_v14, %v11478_v25  ;;  %v7937_v48 = vpop.f32.mrb[13].mxu0 }
 0xd19   : > { %v10260_v10 = vadd.f32 %v11478_v25, %v7937_v48 }
 0xd1a   : > { %10546 = vtanh.f32 %v10259_v15 }
 0xd1b   : > { %10548 = vtanh.f32 %v10260_v10  ;;  %v9887_v34 = vpop.f32.mrb[14].mxu0 }
 0xd1c   : > { %v10539_v50 = vpop.eup %10538  ;;  %v10261_v11 = vadd.f32 %v9887_v34, %v11478_v25  ;;  %v7947_v54 = vpop.f32.mrb[15].mxu0 }
 0xd1d   : > { %v10541_v39 = vpop.eup %10540  ;;  %v8029_v45 = vsel %vm963_vm2, %v10539_v50, 0.0  ;;  %v10262_v47 = vadd.f32 %v11478_v25, %v7947_v54 }
 0xd1e   : > { %v8028_v53 = vsel %vm963_vm2, %v10541_v39, 0.0  ;;  %10550 = vtanh.f32 %v10261_v11 }
 0xd1f   : > { %v8030_v58 = vadd.f32 %v8029_v45, %v8028_v53  ;;  %10552 = vtanh.f32 %v10262_v47  ;;  %v9890_v5 = vpop.f32.mrb[16].mxu0 }
 0xd20   : > { %v10543_v7 = vpop.eup %10542  ;;  %v10263_v9 = vadd.f32 %v9890_v5, %v11478_v25  ;;  %v7957_v56 = vpop.f32.mrb[17].mxu0 }
 0xd21   : > { %v10545_v60 = vpop.eup %10544  ;;  %v8031_v3 = vrot.slane %v8030_v58, 4  ;;  %v8038_v16 = vsel %vm963_vm2, %v10543_v7, 0.0  ;;  %v10264_v6 = vadd.f32 %v11478_v25, %v7957_v56 }
 0xd22   : > { %v8037_v8 = vsel %vm963_vm2, %v10545_v60, 0.0  ;;  %10554 = vtanh.f32 %v10263_v9 }
 0xd23   : > { %v8032_v0 = vadd.f32 %v8031_v3, %v8030_v58  ;;  %v8039_v61 = vadd.f32 %v8038_v16, %v8037_v8  ;;  %10556 = vtanh.f32 %v10264_v6  ;;  %v9893_v13 = vpop.f32.mrb[18].mxu0 }
 0xd24   : > { %v10547_v31 = vpop.eup %10546  ;;  %v10265_v17 = vadd.f32 %v9893_v13, %v11478_v25  ;;  %v7967_v32 = vpop.f32.mrb[19].mxu0 }
 0xd25   : > { %v10549_v18 = vpop.eup %10548  ;;  %v8033_v30 = vrot.slane %v8032_v0, 2  ;;  %v8040_v19 = vrot.slane %v8039_v61, 4  ;;  %v8047_v35 = vsel %vm963_vm2, %v10547_v31, 0.0  ;;  %v10266_v36 = vadd.f32 %v11478_v25, %v7967_v32 }
 0xd26   : > { %v8046_v21 = vsel %vm963_vm2, %v10549_v18, 0.0  ;;  %10558 = vtanh.f32 %v10265_v17 }
 0xd27   : > { %v8041_v22 = vadd.f32 %v8040_v19, %v8039_v61  ;;  %v8048_v23 = vadd.f32 %v8047_v35, %v8046_v21  ;;  %10560 = vtanh.f32 %v10266_v36  ;;  %v9896_v24 = vpop.f32.mrb[20].mxu0  ;;  %v8034_v27 = vadd.f32 %v8033_v30, %v8032_v0 }
 0xd28   : > { %v10551_v38 = vpop.eup %10550  ;;  %v10267_v29 = vadd.f32 %v9896_v24, %v11478_v25  ;;  %v7977_v40 = vpop.f32.mrb[21].mxu0 }
 0xd29   : > { %v10553_v43 = vpop.eup %10552  ;;  %v8042_v44 = vrot.slane %v8041_v22, 2  ;;  %v8049_v46 = vrot.slane %v8048_v23, 4  ;;  %v8056_v49 = vsel %vm963_vm2, %v10551_v38, 0.0  ;;  %v10268_v26 = vadd.f32 %v11478_v25, %v7977_v40 }
 0xd2a   : > { %v8055_v51 = vsel %vm963_vm2, %v10553_v43, 0.0  ;;  %10562 = vtanh.f32 %v10267_v29  ;;  %v8035_v37 = vrot.slane %v8034_v27, 1 }
 0xd2b   : > { %v8043_v33 = vadd.f32 %v8042_v44, %v8041_v22  ;;  %v8050_v52 = vadd.f32 %v8049_v46, %v8048_v23  ;;  %v8057_v20 = vadd.f32 %v8056_v49, %v8055_v51  ;;  %v9899_v55 = vpop.f32.mrb[22].mxu0  ;;  %10564 = vtanh.f32 %v10268_v26 }
 0xd2c   : > { %v10555_v57 = vpop.eup %10554  ;;  %v10269_v63 = vadd.f32 %v9899_v55, %v11478_v25  ;;  %v7987_v59 = vpop.f32.mrb[23].mxu0  ;;  %v8036_v34 = vadd.f32 %v8035_v37, %v8034_v27 }
 0xd2d   : > { %v10557_v42 = vpop.eup %10556  ;;  %v8044_v62 = vrot.slane %v8043_v33, 1  ;;  %v8051_v1 = vrot.slane %v8050_v52, 2  ;;  %v8058_v2 = vrot.slane %v8057_v20, 4  ;;  %v8065_v28 = vsel %vm963_vm2, %v10555_v57, 0.0 }
 0xd2e   : > { %v8064_v41 = vsel %vm963_vm2, %v10557_v42, 0.0  ;;  %10566 = vtanh.f32 %v10269_v63  ;;  %v10270_v4 = vadd.f32 %v11478_v25, %v7987_v59  ;;  %v8622_v42 = vld [vmem:[%s11538_s11] ss:$0 sm:$0xff] }
 0xd2f   : > { %v8045_v12 = vadd.f32 %v8044_v62, %v8043_v33  ;;  %v8052_v14 = vadd.f32 %v8051_v1, %v8050_v52  ;;  %v8059_v15 = vadd.f32 %v8058_v2, %v8057_v20  ;;  %v8066_v48 = vadd.f32 %v8065_v28, %v8064_v41 }
 0xd30   : > { %v10559_v10 = vpop.eup %10558  ;;  %10568 = vtanh.f32 %v10270_v4 }
 0xd31   : > { %v10561_v50 = vpop.eup %10560  ;;  %v8053_v11 = vrot.slane %v8052_v14, 1  ;;  %v8060_v54 = vrot.slane %v8059_v15, 2  ;;  %v8067_v39 = vrot.slane %v8066_v48, 4  ;;  %v8074_v45 = vsel %vm963_vm2, %v10559_v10, 0.0 }
 0xd32   : > { %v8073_v47 = vsel %vm963_vm2, %v10561_v50, 0.0  ;;  %v8120_v53 = vsel %vm8119_vm5, %v8045_v12, %v8036_v34 }
 0xd33   : > { %v8054_v58 = vadd.f32 %v8053_v11, %v8052_v14  ;;  %v8061_v25 = vadd.f32 %v8060_v54, %v8059_v15  ;;  %v8068_v5 = vadd.f32 %v8067_v39, %v8066_v48  ;;  %v8075_v7 = vadd.f32 %v8074_v45, %v8073_v47 }
 0xd34   : > { %v10563_v9 = vpop.eup %10562 }
 0xd35   : > { %v8062_v56 = vrot.slane %v8061_v25, 1  ;;  %v8069_v60 = vrot.slane %v8068_v5, 2  ;;  %v8076_v3 = vrot.slane %v8075_v7, 4  ;;  %v8083_v16 = vsel %vm963_vm2, %v10563_v9, 0.0  ;;  %v10565_v6 = vpop.eup %10564 }
 0xd36   : > { %v8122_v8 = vsel %vm8121_vm6, %v8054_v58, %v8120_v53  ;;  %v8082_v31 = vsel %vm963_vm2, %v10565_v6, 0.0 }
 0xd37   : > { %v8063_v0 = vadd.f32 %v8062_v56, %v8061_v25  ;;  %v8070_v61 = vadd.f32 %v8069_v60, %v8068_v5  ;;  %v8077_v13 = vadd.f32 %v8076_v3, %v8075_v7  ;;  %v8084_v32 = vadd.f32 %v8083_v16, %v8082_v31 }
 0xd38   : > { %v10567_v17 = vpop.eup %10566 }
 0xd39   : > { %v8078_v18 = vrot.slane %v8077_v13, 2  ;;  %v8092_v30 = vsel %vm963_vm2, %v10567_v17, 0.0  ;;  %v8071_v19 = vrot.slane %v8070_v61, 1  ;;  %v8124_v35 = vsel %vm8123_vm7, %v8063_v0, %v8122_v8 }
 0xd3a   : > { %v10569_v36 = vpop.eup %10568  ;;  %v8085_v21 = vrot.slane %v8084_v32, 4 }
 0xd3b   : > { %v8091_v22 = vsel %vm963_vm2, %v10569_v36, 0.0  ;;  %v8072_v23 = vadd.f32 %v8071_v19, %v8070_v61  ;;  %v8079_v24 = vadd.f32 %v8078_v18, %v8077_v13 }
 0xd3c   : > { %v8086_v38 = vadd.f32 %v8085_v21, %v8084_v32  ;;  %v8093_v27 = vadd.f32 %v8092_v30, %v8091_v22 }
 0xd3d   : > { %v8080_v29 = vrot.slane %v8079_v24, 1  ;;  %v8126_v40 = vsel %vm8125_vm8, %v8072_v23, %v8124_v35 }
 0xd3e   : > { %v8094_v43 = vrot.slane %v8093_v27, 4  ;;  %v8087_v44 = vrot.slane %v8086_v38, 2 }
 0xd3f   : > { %v8081_v46 = vadd.f32 %v8080_v29, %v8079_v24 }
 0xd40   : > { %v8088_v49 = vadd.f32 %v8087_v44, %v8086_v38  ;;  %v8095_v51 = vadd.f32 %v8094_v43, %v8093_v27 }
 0xd41   : > { %v8128_v26 = vsel %vm8127_vm9, %v8081_v46, %v8126_v40 }
 0xd42   : > { %v8089_v33 = vrot.slane %v8088_v49, 1  ;;  %v8096_v52 = vrot.slane %v8095_v51, 2 }
 0xd44   : > { %v8090_v20 = vadd.f32 %v8089_v33, %v8088_v49  ;;  %v8097_v55 = vadd.f32 %v8096_v52, %v8095_v51 }
 0xd46   : > { %v8098_v57 = vrot.slane %v8097_v55, 1  ;;  %v8130_v37 = vsel %vm8129_vm10, %v8090_v20, %v8128_v26 }
 0xd48   : > { %v8099_v63 = vadd.f32 %v8098_v57, %v8097_v55 }
 0xd4a   : > { %v8132_v59 = vsel %vm8131_vm11, %v8099_v63, %v8130_v37 }
 0xd4b   : > { %9909 = vmatmul.mubr.msk.f32.vlgmr.msra.gmra.mrb[150].mxu1 %vm963_vm2, %v8132_v59 }
 0xe1e   : > { %v8201_v62 = vpop.f32.mrb[150].mxu1 }
 0xe1f   : > { %v8202_v1 = vadd.f32 %v8622_v42, %v8201_v62  ;;  %v9910_v2 = vpop.f32.mrb[151].mxu1 }
 0xe21   : > { %v8206_v28 = vsel %vm8205_vm12, %v8202_v1, -inf }
 0xe22   : > { %8207 = vmax.xlane.f32.xlu0 %v8206_v28 }
 0xeaf   : > { %v8208_v41 = vpop.xlane.xlu0 %8207 }
 0xeb0   : > { %v8209_v4 = vsub.f32 %v8202_v1, %v8208_v41 }
 0xeb2   : > { %v8210_v12 = vmul.f32 1.442695, %v8209_v4 }
 0xeb4   : > { %10570 = vpow2.f32 %v8210_v12 }
 0xebe   : > { %v10571_v14 = vpop.eup %10570 }
 0xebf   : > { %v8212_v15 = vsel %vm8205_vm12, %v10571_v14, 0.0 }
 0xec0   : > { %8213 = vadd.xlane.f32.xlu1 %v8212_v15 }
 0xf4d   : > { %v8214_v48 = vpop.xlane.xlu1 %8213 }
 0xf4e   : > { %10572 = vrcp.f32 %v8214_v48 }
 0xf58   : > { %v10573_v10 = vpop.eup %10572 }
 0xf59   : > { %v8216_v34 = vmul.f32 %v10573_v10, %v10571_v14 }
 0xf5b   : > { %8217 = vst.msk [vmem:[%s441_s14] sm:$0xff] %vm8205_vm12, %v8216_v34 }
 0xf5c PF: > { %s22_s21 = sadd.s32 1, %s10596_s21  }
 0xf5d   : > { %p19_p5 = scmp.ge.s32.totalorder %s22_s21, 4  }
 0xf5f   :  { %21 = sbr.rel (!%p19_p5) target bundleno = 1 (0x1), region = 107 }

</bundles_post_ra>
